<compile_context>
chip_gen: v7x
topology: tpu7x:2x2x1
jax: 0.10.0
libtpu: 0.0.40
codegen_flags: <defaults>
</compile_context>

<pallas_src>
import jax
import jax.numpy as jnp
from jax.experimental import pallas as pl
from jax.experimental.pallas import tpu as pltpu

VMEM = pltpu.MemorySpace.VMEM
SMEM = pltpu.MemorySpace.SMEM

N_BRANCH = 3  # student, teacherB, teacherE


# ----------------------------------------------------------------------------
# Single fused kernel: 3x (GCN + PReLU + projector MLP) -> predictor MLP ->
# convex mix -> 3x similar_loss (merged matmul) -> gamma mix -> mean.
# ----------------------------------------------------------------------------
def _gtcln_kernel(sc_ref,
                  adj_ref, feat_ref, gw_ref, gb_ref,
                  pw1_ref, pb1_ref, pg_ref, pbb_ref, pw2_ref, pb2_ref,
                  qw1_ref, qb1_ref, qg_ref, qbb_ref, qw2_ref, qb2_ref,
                  p_ref, o_ref):
    n = adj_ref.shape[1]

    def prelu(x, a):
        return jnp.where(x > 0, x, a * x)

    def batchnorm(h, g, b):
        # Single-pass train-mode stats (biased var), eps=1e-5 (torch default).
        inv_n = 1.0 / h.shape[0]
        mean = jnp.sum(h, axis=0, keepdims=True) * inv_n
        ex2 = jnp.sum(h * h, axis=0, keepdims=True) * inv_n
        var = ex2 - mean * mean
        return (h - mean) * jax.lax.rsqrt(var + 1e-5) * g + b

    def mxdot(a, b):
        # bf16 MXU operands, f32 accumulation.
        return jnp.dot(a.astype(jnp.bfloat16), b.astype(jnp.bfloat16),
                       preferred_element_type=jnp.float32)

    # Identity for the in-kernel A + I.
    row = jax.lax.broadcasted_iota(jnp.int32, (n, n), 0)
    col = jax.lax.broadcasted_iota(jnp.int32, (n, n), 1)
    eye = (row == col).astype(jnp.float32)

    # --- three encoder branches, fully unrolled ------------------------------
    projs = []
    for br in range(N_BRANCH):
        a_gcn = sc_ref[br]             # GCN PReLU slope
        a_mlp = sc_ref[N_BRANCH + br]  # projector PReLU slope

        # D^-1/2 (A+I) D^-1/2 X folded as  dinv * ((A+I) @ (dinv * X)).
        adj = adj_ref[br] + eye                                    # (N, N)
        dinv = jax.lax.rsqrt(jnp.sum(adj, axis=-1, keepdims=True)) # (N, 1)
        ax = dinv * mxdot(adj, dinv * feat_ref[br])                # (N, F)

        # GCN layer: (norm_adj @ x) @ W + b, then PReLU.
        h = mxdot(ax, gw_ref[br]) + gb_ref[br]
        rep = prelu(h, a_gcn)

        # Projector MLP: Linear -> BatchNorm1d -> PReLU -> Linear.
        h1 = mxdot(rep, pw1_ref[br]) + pb1_ref[br]
        act = prelu(batchnorm(h1, pg_ref[br], pbb_ref[br]), a_mlp)
        projs.append(mxdot(act, pw2_ref[br]) + pb2_ref[br])        # (N, P)

    s_proj, t_base, t_exp = projs   # stay in vregs/VMEM — never hit HBM

    # --- predictor MLP (student branch) --------------------------------------
    a_pred = sc_ref[2 * N_BRANCH]
    gamma = sc_ref[2 * N_BRANCH + 1]
    h1 = mxdot(s_proj, qw1_ref[...]) + qb1_ref[...]
    act = prelu(batchnorm(h1, qg_ref[...], qbb_ref[...]), a_pred)
    pred = mxdot(act, qw2_ref[...]) + qb2_ref[...]                 # (N, P)

    # Convex mix of the two teacher projections.
    p = p_ref[...]
    mix = p * t_base + (1.0 - p) * t_exp

    # --- similar_loss x3, merged into one (N, 3N) matmul ----------------------
    def l2norm(x):
        return x * jax.lax.rsqrt(jnp.sum(x * x, axis=-1, keepdims=True) + 1e-24)

    z1 = l2norm(pred)
    zb = l2norm(t_base)
    ze = l2norm(t_exp)
    zm = l2norm(mix)

    z2 = jnp.concatenate([zb, ze, zm], axis=0)                     # (3N, P)
    s = jax.lax.dot_general(z1.astype(jnp.bfloat16), z2.astype(jnp.bfloat16),
                            (((1,), (1,)), ((), ())),
                            preferred_element_type=jnp.float32)    # (N, 3N)
    e = jnp.exp(s)   # rows L2-normalized => S in [-1,1], logsumexp-safe
    rs_b = jnp.sum(e[:, 0:n], axis=-1, keepdims=True)
    rs_e = jnp.sum(e[:, n:2 * n], axis=-1, keepdims=True)
    rs_m = jnp.sum(e[:, 2 * n:3 * n], axis=-1, keepdims=True)

    # Diagonals computed directly (no gather from S).
    d_b = jnp.sum(z1 * zb, axis=-1, keepdims=True)
    d_e = jnp.sum(z1 * ze, axis=-1, keepdims=True)
    d_m = jnp.sum(z1 * zm, axis=-1, keepdims=True)

    l1 = jnp.log(rs_b) - d_b
    l2 = jnp.log(rs_e) - d_e
    l3 = jnp.log(rs_m) - d_m
    loss = gamma * (l1 + l2) + (1.0 - 2.0 * gamma) * l3            # (N, 1)
    o_ref[0, 0] = jnp.sum(loss) * (1.0 / n)                        # scalar mean


def gtcln_pallas(scalars, adj3, feat3, encoders, predictor, P):
    operands = (scalars, adj3, feat3,
                encoders["gcn_w"], encoders["gcn_b"],
                encoders["projector"]["w1"], encoders["projector"]["b1"],
                encoders["projector"]["bn_g"], encoders["projector"]["bn_b"],
                encoders["projector"]["w2"], encoders["projector"]["b2"],
                predictor["w1"], predictor["b1"],
                predictor["bn_g"], predictor["bn_b"],
                predictor["w2"], predictor["b2"],
                P)
    in_specs = ([pl.BlockSpec(memory_space=SMEM)]
                + [pl.BlockSpec(memory_space=VMEM)] * (len(operands) - 1))
    out = pl.pallas_call(
        _gtcln_kernel,
        out_shape=jax.ShapeDtypeStruct((1, 1), jnp.float32),
        in_specs=in_specs,
        out_specs=pl.BlockSpec(memory_space=SMEM),
    )(*operands)
    return out[0, 0]


# ----------------------------------------------------------------------------
# Parameters (forward only)
# ----------------------------------------------------------------------------
def _linear_init(key, fin, fout):
    kw, kb = jax.random.split(key)
    w = jax.random.normal(kw, (fin, fout), jnp.float32) / jnp.sqrt(fin)
    b = jax.random.normal(kb, (1, fout), jnp.float32) * 0.01
    return w, b


def _mlp_init(key, fin, hidden, fout):
    k1, k2 = jax.random.split(key)
    w1, b1 = _linear_init(k1, fin, hidden)
    w2, b2 = _linear_init(k2, hidden, fout)
    return {
        "w1": w1, "b1": b1,
        "bn_g": jnp.ones((1, hidden), jnp.float32),
        "bn_b": jnp.zeros((1, hidden), jnp.float32),
        "alpha": jnp.full((1, 1), 0.25, jnp.float32),   # PReLU default
        "w2": w2, "b2": b2,
    }


def init_params(key, feat_size, gcn_out=512, proj_hidden=32, proj_size=32,
                pred_hidden=32, pred_size=32):
    k_gcn, k_proj, k_pred = jax.random.split(key, 3)
    gcn_w, gcn_b = _linear_init(k_gcn, feat_size, gcn_out)
    enc = {
        "gcn_w": gcn_w, "gcn_b": gcn_b,
        "gcn_alpha": jnp.full((1, 1), 0.25, jnp.float32),
        "projector": _mlp_init(k_proj, gcn_out, proj_hidden, proj_size),
    }
    # student / teacherB / teacherE are deep copies at init: stack along axis 0.
    encoders = jax.tree_util.tree_map(
        lambda x: jnp.stack([x, x, x], axis=0), enc)
    return {
        "encoders": encoders,
        "predictor": _mlp_init(k_pred, feat_size if False else proj_size,
                               pred_hidden, pred_size),
    }


# ----------------------------------------------------------------------------
# GTCLN forward (one pallas_call total)
# ----------------------------------------------------------------------------
@jax.jit
def gtcln_forward(params, adj3, feat3, P, gamma):
    enc = params["encoders"]
    pred = params["predictor"]
    # [gcn_alpha x3, projector_alpha x3, predictor_alpha, gamma] as SMEM f32s.
    scalars = jnp.concatenate(
        [enc["gcn_alpha"].reshape(N_BRANCH),
         enc["projector"]["alpha"].reshape(N_BRANCH),
         pred["alpha"].reshape(1),
         jnp.reshape(gamma, (1,)).astype(jnp.float32)], axis=0)   # (8,)
    return gtcln_pallas(scalars, adj3, feat3, enc, pred, P)


# ----------------------------------------------------------------------------
# main
# ----------------------------------------------------------------------------
if __name__ == "__main__":
    N = 8          # node_num
    FEAT = 16      # feat_size
    PROJ = 32      # projection_size == prediction_size (required by sim())
    GAMMA = 0.4

    key = jax.random.PRNGKey(0)
    k_adj, k_feat, k_p, k_param, k_d1, k_d2 = jax.random.split(key, 6)

    # Deterministic synthetic graph (raw adjacency; A+I and D^-1/2 norm are
    # computed inside the kernel).
    a = jax.random.bernoulli(k_adj, 0.3, (N, N)).astype(jnp.float32)
    adj_ori = jnp.maximum(a, a.T) * (1.0 - jnp.eye(N, dtype=jnp.float32))
    feat_ori = jax.random.normal(k_feat, (N, FEAT), jnp.float32)

    # TODO(synk): aug.* score-guided edge/feature dropping and process.* sparse
    # adjacency handling live in external modules; we stand in with
    # deterministic feature masks and in-kernel dense symmetric normalization.
    feat_student = feat_ori * jax.random.bernoulli(
        k_d1, 0.9, (1, FEAT)).astype(jnp.float32)
    feat_base = feat_ori
    feat_expand = feat_ori * jax.random.bernoulli(
        k_d2, 0.9, (1, FEAT)).astype(jnp.float32)

    # Stack the three branches (student, teacherB, teacherE) along axis 0.
    adj3 = jnp.stack([adj_ori, adj_ori, adj_ori], axis=0)              # (3, N, N)
    feat3 = jnp.stack([feat_student, feat_base, feat_expand], axis=0)  # (3, N, F)

    # torch.rand(Student_pred.shape) -> deterministic jax.random equivalent.
    P = jax.random.uniform(k_p, (N, PROJ), jnp.float32)

    params = init_params(k_param, FEAT, gcn_out=512, proj_hidden=32,
                         proj_size=PROJ, pred_hidden=32, pred_size=PROJ)

    gamma = jnp.float32(GAMMA)   # traced, not static: no recompile when swept
    loss = gtcln_forward(params, adj3, feat3, P, gamma)
    jax.block_until_ready(loss)
    assert loss.shape == () and jnp.isfinite(loss)
    print("KERNEL_OK")
</pallas_src>

<mosaic_0001>
module attributes {stable_mosaic.version = 11 : i64} {
  func.func @_gtcln_kernel(%arg0: memref<8xf32, #tpu.memory_space<smem>>, %arg1: memref<3x8x8xf32, #tpu.memory_space<vmem>>, %arg2: memref<3x8x16xf32, #tpu.memory_space<vmem>>, %arg3: memref<3x16x512xf32, #tpu.memory_space<vmem>>, %arg4: memref<3x1x512xf32, #tpu.memory_space<vmem>>, %arg5: memref<3x512x32xf32, #tpu.memory_space<vmem>>, %arg6: memref<3x1x32xf32, #tpu.memory_space<vmem>>, %arg7: memref<3x1x32xf32, #tpu.memory_space<vmem>>, %arg8: memref<3x1x32xf32, #tpu.memory_space<vmem>>, %arg9: memref<3x32x32xf32, #tpu.memory_space<vmem>>, %arg10: memref<3x1x32xf32, #tpu.memory_space<vmem>>, %arg11: memref<32x32xf32, #tpu.memory_space<vmem>>, %arg12: memref<1x32xf32, #tpu.memory_space<vmem>>, %arg13: memref<1x32xf32, #tpu.memory_space<vmem>>, %arg14: memref<1x32xf32, #tpu.memory_space<vmem>>, %arg15: memref<32x32xf32, #tpu.memory_space<vmem>>, %arg16: memref<1x32xf32, #tpu.memory_space<vmem>>, %arg17: memref<8x32xf32, #tpu.memory_space<vmem>>, %arg18: memref<1x1xf32, #tpu.memory_space<smem>>) attributes {dimension_semantics = [], scalar_prefetch = 0 : i64, scratch_operands = 0 : i64, tpu.core_type = #tpu.core_type<tc>} {
    %0 = tpu.iota {dimensions = array<i32: 0>} : vector<8x8xi32>
    %1 = tpu.iota {dimensions = array<i32: 1>} : vector<8x8xi32>
    %2 = arith.cmpi eq, %0, %1 : vector<8x8xi32>
    %3 = arith.extui %2 : vector<8x8xi1> to vector<8x8xi32>
    %4 = arith.sitofp %3 : vector<8x8xi32> to vector<8x8xf32>
    %c0 = arith.constant 0 : index
    %5 = memref.load %arg0[%c0] : memref<8xf32, #tpu.memory_space<smem>>
    %c3 = arith.constant 3 : index
    %6 = memref.load %arg0[%c3] : memref<8xf32, #tpu.memory_space<smem>>
    %c0_0 = arith.constant 0 : index
    %c0_1 = arith.constant 0 : index
    %c0_2 = arith.constant 0 : index
    %7 = vector.load %arg1[%c0_0, %c0_1, %c0_2] : memref<3x8x8xf32, #tpu.memory_space<vmem>>, vector<1x8x8xf32>
    %8 = vector.shape_cast %7 : vector<1x8x8xf32> to vector<8x8xf32>
    %9 = arith.addf %8, %4 : vector<8x8xf32>
    %cst = arith.constant dense<0.000000e+00> : vector<8xf32>
    %10 = vector.multi_reduction <add>, %9, %cst [1] : vector<8x8xf32> to vector<8xf32>
    %11 = vector.shape_cast %10 : vector<8xf32> to vector<8x1xf32>
    %12 = math.rsqrt %11 : vector<8x1xf32>
    %c0_3 = arith.constant 0 : index
    %c0_4 = arith.constant 0 : index
    %c0_5 = arith.constant 0 : index
    %13 = vector.load %arg2[%c0_3, %c0_4, %c0_5] : memref<3x8x16xf32, #tpu.memory_space<vmem>>, vector<1x8x16xf32>
    %14 = vector.shape_cast %13 : vector<1x8x16xf32> to vector<8x16xf32>
    %15 = vector.broadcast %12 : vector<8x1xf32> to vector<8x16xf32>
    %16 = arith.mulf %15, %14 : vector<8x16xf32>
    %17 = arith.truncf %9 : vector<8x8xf32> to vector<8x8xbf16>
    %18 = arith.truncf %16 : vector<8x16xf32> to vector<8x16xbf16>
    %cst_6 = arith.constant dense<0.000000e+00> : vector<8x16xf32>
    %19 = tpu.matmul %17, %18, %cst_6 {dimension_numbers = #tpu.dot_dimension_numbers<[1], [0], [0], [1], [0, 0, 1, 1], [], []>} : vector<8x8xbf16>, vector<8x16xbf16>, vector<8x16xf32> -> vector<8x16xf32>
    %20 = vector.broadcast %12 : vector<8x1xf32> to vector<8x16xf32>
    %21 = arith.mulf %20, %19 : vector<8x16xf32>
    %c0_7 = arith.constant 0 : index
    %c0_8 = arith.constant 0 : index
    %c0_9 = arith.constant 0 : index
    %22 = vector.load %arg3[%c0_7, %c0_8, %c0_9] : memref<3x16x512xf32, #tpu.memory_space<vmem>>, vector<1x16x512xf32>
    %23 = vector.shape_cast %22 : vector<1x16x512xf32> to vector<16x512xf32>
    %24 = arith.truncf %21 : vector<8x16xf32> to vector<8x16xbf16>
    %25 = arith.truncf %23 : vector<16x512xf32> to vector<16x512xbf16>
    %cst_10 = arith.constant dense<0.000000e+00> : vector<8x512xf32>
    %26 = tpu.matmul %24, %25, %cst_10 {dimension_numbers = #tpu.dot_dimension_numbers<[1], [0], [0], [1], [0, 0, 1, 1], [], []>} : vector<8x16xbf16>, vector<16x512xbf16>, vector<8x512xf32> -> vector<8x512xf32>
    %c0_11 = arith.constant 0 : index
    %c0_12 = arith.constant 0 : index
    %c0_13 = arith.constant 0 : index
    %27 = vector.load %arg4[%c0_11, %c0_12, %c0_13] : memref<3x1x512xf32, #tpu.memory_space<vmem>>, vector<1x1x512xf32>
    %28 = vector.shape_cast %27 : vector<1x1x512xf32> to vector<1x512xf32>
    %29 = vector.broadcast %28 : vector<1x512xf32> to vector<8x512xf32>
    %30 = arith.addf %26, %29 : vector<8x512xf32>
    %cst_14 = arith.constant 0.000000e+00 : f32
    %31 = vector.broadcast %cst_14 : f32 to vector<8x512xf32>
    %32 = arith.cmpf ogt, %30, %31 : vector<8x512xf32>
    %33 = vector.broadcast %5 : f32 to vector<8x512xf32>
    %34 = arith.mulf %33, %30 : vector<8x512xf32>
    %35 = arith.select %32, %30, %34 : vector<8x512xi1>, vector<8x512xf32>
    %c0_15 = arith.constant 0 : index
    %c0_16 = arith.constant 0 : index
    %c0_17 = arith.constant 0 : index
    %36 = vector.load %arg5[%c0_15, %c0_16, %c0_17] : memref<3x512x32xf32, #tpu.memory_space<vmem>>, vector<1x512x32xf32>
    %37 = vector.shape_cast %36 : vector<1x512x32xf32> to vector<512x32xf32>
    %38 = arith.truncf %35 : vector<8x512xf32> to vector<8x512xbf16>
    %39 = arith.truncf %37 : vector<512x32xf32> to vector<512x32xbf16>
    %cst_18 = arith.constant dense<0.000000e+00> : vector<8x32xf32>
    %40 = tpu.matmul %38, %39, %cst_18 {dimension_numbers = #tpu.dot_dimension_numbers<[1], [0], [0], [1], [0, 0, 1, 1], [], []>} : vector<8x512xbf16>, vector<512x32xbf16>, vector<8x32xf32> -> vector<8x32xf32>
    %c0_19 = arith.constant 0 : index
    %c0_20 = arith.constant 0 : index
    %c0_21 = arith.constant 0 : index
    %41 = vector.load %arg6[%c0_19, %c0_20, %c0_21] : memref<3x1x32xf32, #tpu.memory_space<vmem>>, vector<1x1x32xf32>
    %42 = vector.shape_cast %41 : vector<1x1x32xf32> to vector<1x32xf32>
    %43 = vector.broadcast %42 : vector<1x32xf32> to vector<8x32xf32>
    %44 = arith.addf %40, %43 : vector<8x32xf32>
    %c0_22 = arith.constant 0 : index
    %c0_23 = arith.constant 0 : index
    %c0_24 = arith.constant 0 : index
    %45 = vector.load %arg7[%c0_22, %c0_23, %c0_24] : memref<3x1x32xf32, #tpu.memory_space<vmem>>, vector<1x1x32xf32>
    %46 = vector.shape_cast %45 : vector<1x1x32xf32> to vector<1x32xf32>
    %c0_25 = arith.constant 0 : index
    %c0_26 = arith.constant 0 : index
    %c0_27 = arith.constant 0 : index
    %47 = vector.load %arg8[%c0_25, %c0_26, %c0_27] : memref<3x1x32xf32, #tpu.memory_space<vmem>>, vector<1x1x32xf32>
    %48 = vector.shape_cast %47 : vector<1x1x32xf32> to vector<1x32xf32>
    %cst_28 = arith.constant dense<0.000000e+00> : vector<32xf32>
    %49 = vector.multi_reduction <add>, %44, %cst_28 [0] : vector<8x32xf32> to vector<32xf32>
    %50 = vector.shape_cast %49 : vector<32xf32> to vector<1x32xf32>
    %cst_29 = arith.constant 1.250000e-01 : f32
    %51 = vector.broadcast %cst_29 : f32 to vector<1x32xf32>
    %52 = arith.mulf %50, %51 : vector<1x32xf32>
    %53 = arith.mulf %44, %44 : vector<8x32xf32>
    %cst_30 = arith.constant dense<0.000000e+00> : vector<32xf32>
    %54 = vector.multi_reduction <add>, %53, %cst_30 [0] : vector<8x32xf32> to vector<32xf32>
    %55 = vector.shape_cast %54 : vector<32xf32> to vector<1x32xf32>
    %cst_31 = arith.constant 1.250000e-01 : f32
    %56 = vector.broadcast %cst_31 : f32 to vector<1x32xf32>
    %57 = arith.mulf %55, %56 : vector<1x32xf32>
    %58 = arith.mulf %52, %52 : vector<1x32xf32>
    %59 = arith.subf %57, %58 : vector<1x32xf32>
    %60 = vector.broadcast %52 : vector<1x32xf32> to vector<8x32xf32>
    %61 = arith.subf %44, %60 : vector<8x32xf32>
    %cst_32 = arith.constant 9.99999974E-6 : f32
    %62 = vector.broadcast %cst_32 : f32 to vector<1x32xf32>
    %63 = arith.addf %59, %62 : vector<1x32xf32>
    %64 = math.rsqrt %63 : vector<1x32xf32>
    %65 = vector.broadcast %64 : vector<1x32xf32> to vector<8x32xf32>
    %66 = arith.mulf %61, %65 : vector<8x32xf32>
    %67 = vector.broadcast %46 : vector<1x32xf32> to vector<8x32xf32>
    %68 = arith.mulf %66, %67 : vector<8x32xf32>
    %69 = vector.broadcast %48 : vector<1x32xf32> to vector<8x32xf32>
    %70 = arith.addf %68, %69 : vector<8x32xf32>
    %cst_33 = arith.constant 0.000000e+00 : f32
    %71 = vector.broadcast %cst_33 : f32 to vector<8x32xf32>
    %72 = arith.cmpf ogt, %70, %71 : vector<8x32xf32>
    %73 = vector.broadcast %6 : f32 to vector<8x32xf32>
    %74 = arith.mulf %73, %70 : vector<8x32xf32>
    %75 = arith.select %72, %70, %74 : vector<8x32xi1>, vector<8x32xf32>
    %c0_34 = arith.constant 0 : index
    %c0_35 = arith.constant 0 : index
    %c0_36 = arith.constant 0 : index
    %76 = vector.load %arg9[%c0_34, %c0_35, %c0_36] : memref<3x32x32xf32, #tpu.memory_space<vmem>>, vector<1x32x32xf32>
    %77 = vector.shape_cast %76 : vector<1x32x32xf32> to vector<32x32xf32>
    %78 = arith.truncf %75 : vector<8x32xf32> to vector<8x32xbf16>
    %79 = arith.truncf %77 : vector<32x32xf32> to vector<32x32xbf16>
    %cst_37 = arith.constant dense<0.000000e+00> : vector<8x32xf32>
    %80 = tpu.matmul %78, %79, %cst_37 {dimension_numbers = #tpu.dot_dimension_numbers<[1], [0], [0], [1], [0, 0, 1, 1], [], []>} : vector<8x32xbf16>, vector<32x32xbf16>, vector<8x32xf32> -> vector<8x32xf32>
    %c0_38 = arith.constant 0 : index
    %c0_39 = arith.constant 0 : index
    %c0_40 = arith.constant 0 : index
    %81 = vector.load %arg10[%c0_38, %c0_39, %c0_40] : memref<3x1x32xf32, #tpu.memory_space<vmem>>, vector<1x1x32xf32>
    %82 = vector.shape_cast %81 : vector<1x1x32xf32> to vector<1x32xf32>
    %83 = vector.broadcast %82 : vector<1x32xf32> to vector<8x32xf32>
    %84 = arith.addf %80, %83 : vector<8x32xf32>
    %c1 = arith.constant 1 : index
    %85 = memref.load %arg0[%c1] : memref<8xf32, #tpu.memory_space<smem>>
    %c4 = arith.constant 4 : index
    %86 = memref.load %arg0[%c4] : memref<8xf32, #tpu.memory_space<smem>>
    %c1_41 = arith.constant 1 : index
    %c0_42 = arith.constant 0 : index
    %c0_43 = arith.constant 0 : index
    %87 = vector.load %arg1[%c1_41, %c0_42, %c0_43] : memref<3x8x8xf32, #tpu.memory_space<vmem>>, vector<1x8x8xf32>
    %88 = vector.shape_cast %87 : vector<1x8x8xf32> to vector<8x8xf32>
    %89 = arith.addf %88, %4 : vector<8x8xf32>
    %cst_44 = arith.constant dense<0.000000e+00> : vector<8xf32>
    %90 = vector.multi_reduction <add>, %89, %cst_44 [1] : vector<8x8xf32> to vector<8xf32>
    %91 = vector.shape_cast %90 : vector<8xf32> to vector<8x1xf32>
    %92 = math.rsqrt %91 : vector<8x1xf32>
    %c1_45 = arith.constant 1 : index
    %c0_46 = arith.constant 0 : index
    %c0_47 = arith.constant 0 : index
    %93 = vector.load %arg2[%c1_45, %c0_46, %c0_47] : memref<3x8x16xf32, #tpu.memory_space<vmem>>, vector<1x8x16xf32>
    %94 = vector.shape_cast %93 : vector<1x8x16xf32> to vector<8x16xf32>
    %95 = vector.broadcast %92 : vector<8x1xf32> to vector<8x16xf32>
    %96 = arith.mulf %95, %94 : vector<8x16xf32>
    %97 = arith.truncf %89 : vector<8x8xf32> to vector<8x8xbf16>
    %98 = arith.truncf %96 : vector<8x16xf32> to vector<8x16xbf16>
    %cst_48 = arith.constant dense<0.000000e+00> : vector<8x16xf32>
    %99 = tpu.matmul %97, %98, %cst_48 {dimension_numbers = #tpu.dot_dimension_numbers<[1], [0], [0], [1], [0, 0, 1, 1], [], []>} : vector<8x8xbf16>, vector<8x16xbf16>, vector<8x16xf32> -> vector<8x16xf32>
    %100 = vector.broadcast %92 : vector<8x1xf32> to vector<8x16xf32>
    %101 = arith.mulf %100, %99 : vector<8x16xf32>
    %c1_49 = arith.constant 1 : index
    %c0_50 = arith.constant 0 : index
    %c0_51 = arith.constant 0 : index
    %102 = vector.load %arg3[%c1_49, %c0_50, %c0_51] : memref<3x16x512xf32, #tpu.memory_space<vmem>>, vector<1x16x512xf32>
    %103 = vector.shape_cast %102 : vector<1x16x512xf32> to vector<16x512xf32>
    %104 = arith.truncf %101 : vector<8x16xf32> to vector<8x16xbf16>
    %105 = arith.truncf %103 : vector<16x512xf32> to vector<16x512xbf16>
    %cst_52 = arith.constant dense<0.000000e+00> : vector<8x512xf32>
    %106 = tpu.matmul %104, %105, %cst_52 {dimension_numbers = #tpu.dot_dimension_numbers<[1], [0], [0], [1], [0, 0, 1, 1], [], []>} : vector<8x16xbf16>, vector<16x512xbf16>, vector<8x512xf32> -> vector<8x512xf32>
    %c1_53 = arith.constant 1 : index
    %c0_54 = arith.constant 0 : index
    %c0_55 = arith.constant 0 : index
    %107 = vector.load %arg4[%c1_53, %c0_54, %c0_55] : memref<3x1x512xf32, #tpu.memory_space<vmem>>, vector<1x1x512xf32>
    %108 = vector.shape_cast %107 : vector<1x1x512xf32> to vector<1x512xf32>
    %109 = vector.broadcast %108 : vector<1x512xf32> to vector<8x512xf32>
    %110 = arith.addf %106, %109 : vector<8x512xf32>
    %cst_56 = arith.constant 0.000000e+00 : f32
    %111 = vector.broadcast %cst_56 : f32 to vector<8x512xf32>
    %112 = arith.cmpf ogt, %110, %111 : vector<8x512xf32>
    %113 = vector.broadcast %85 : f32 to vector<8x512xf32>
    %114 = arith.mulf %113, %110 : vector<8x512xf32>
    %115 = arith.select %112, %110, %114 : vector<8x512xi1>, vector<8x512xf32>
    %c1_57 = arith.constant 1 : index
    %c0_58 = arith.constant 0 : index
    %c0_59 = arith.constant 0 : index
    %116 = vector.load %arg5[%c1_57, %c0_58, %c0_59] : memref<3x512x32xf32, #tpu.memory_space<vmem>>, vector<1x512x32xf32>
    %117 = vector.shape_cast %116 : vector<1x512x32xf32> to vector<512x32xf32>
    %118 = arith.truncf %115 : vector<8x512xf32> to vector<8x512xbf16>
    %119 = arith.truncf %117 : vector<512x32xf32> to vector<512x32xbf16>
    %cst_60 = arith.constant dense<0.000000e+00> : vector<8x32xf32>
    %120 = tpu.matmul %118, %119, %cst_60 {dimension_numbers = #tpu.dot_dimension_numbers<[1], [0], [0], [1], [0, 0, 1, 1], [], []>} : vector<8x512xbf16>, vector<512x32xbf16>, vector<8x32xf32> -> vector<8x32xf32>
    %c1_61 = arith.constant 1 : index
    %c0_62 = arith.constant 0 : index
    %c0_63 = arith.constant 0 : index
    %121 = vector.load %arg6[%c1_61, %c0_62, %c0_63] : memref<3x1x32xf32, #tpu.memory_space<vmem>>, vector<1x1x32xf32>
    %122 = vector.shape_cast %121 : vector<1x1x32xf32> to vector<1x32xf32>
    %123 = vector.broadcast %122 : vector<1x32xf32> to vector<8x32xf32>
    %124 = arith.addf %120, %123 : vector<8x32xf32>
    %c1_64 = arith.constant 1 : index
    %c0_65 = arith.constant 0 : index
    %c0_66 = arith.constant 0 : index
    %125 = vector.load %arg7[%c1_64, %c0_65, %c0_66] : memref<3x1x32xf32, #tpu.memory_space<vmem>>, vector<1x1x32xf32>
    %126 = vector.shape_cast %125 : vector<1x1x32xf32> to vector<1x32xf32>
    %c1_67 = arith.constant 1 : index
    %c0_68 = arith.constant 0 : index
    %c0_69 = arith.constant 0 : index
    %127 = vector.load %arg8[%c1_67, %c0_68, %c0_69] : memref<3x1x32xf32, #tpu.memory_space<vmem>>, vector<1x1x32xf32>
    %128 = vector.shape_cast %127 : vector<1x1x32xf32> to vector<1x32xf32>
    %cst_70 = arith.constant dense<0.000000e+00> : vector<32xf32>
    %129 = vector.multi_reduction <add>, %124, %cst_70 [0] : vector<8x32xf32> to vector<32xf32>
    %130 = vector.shape_cast %129 : vector<32xf32> to vector<1x32xf32>
    %cst_71 = arith.constant 1.250000e-01 : f32
    %131 = vector.broadcast %cst_71 : f32 to vector<1x32xf32>
    %132 = arith.mulf %130, %131 : vector<1x32xf32>
    %133 = arith.mulf %124, %124 : vector<8x32xf32>
    %cst_72 = arith.constant dense<0.000000e+00> : vector<32xf32>
    %134 = vector.multi_reduction <add>, %133, %cst_72 [0] : vector<8x32xf32> to vector<32xf32>
    %135 = vector.shape_cast %134 : vector<32xf32> to vector<1x32xf32>
    %cst_73 = arith.constant 1.250000e-01 : f32
    %136 = vector.broadcast %cst_73 : f32 to vector<1x32xf32>
    %137 = arith.mulf %135, %136 : vector<1x32xf32>
    %138 = arith.mulf %132, %132 : vector<1x32xf32>
    %139 = arith.subf %137, %138 : vector<1x32xf32>
    %140 = vector.broadcast %132 : vector<1x32xf32> to vector<8x32xf32>
    %141 = arith.subf %124, %140 : vector<8x32xf32>
    %cst_74 = arith.constant 9.99999974E-6 : f32
    %142 = vector.broadcast %cst_74 : f32 to vector<1x32xf32>
    %143 = arith.addf %139, %142 : vector<1x32xf32>
    %144 = math.rsqrt %143 : vector<1x32xf32>
    %145 = vector.broadcast %144 : vector<1x32xf32> to vector<8x32xf32>
    %146 = arith.mulf %141, %145 : vector<8x32xf32>
    %147 = vector.broadcast %126 : vector<1x32xf32> to vector<8x32xf32>
    %148 = arith.mulf %146, %147 : vector<8x32xf32>
    %149 = vector.broadcast %128 : vector<1x32xf32> to vector<8x32xf32>
    %150 = arith.addf %148, %149 : vector<8x32xf32>
    %cst_75 = arith.constant 0.000000e+00 : f32
    %151 = vector.broadcast %cst_75 : f32 to vector<8x32xf32>
    %152 = arith.cmpf ogt, %150, %151 : vector<8x32xf32>
    %153 = vector.broadcast %86 : f32 to vector<8x32xf32>
    %154 = arith.mulf %153, %150 : vector<8x32xf32>
    %155 = arith.select %152, %150, %154 : vector<8x32xi1>, vector<8x32xf32>
    %c1_76 = arith.constant 1 : index
    %c0_77 = arith.constant 0 : index
    %c0_78 = arith.constant 0 : index
    %156 = vector.load %arg9[%c1_76, %c0_77, %c0_78] : memref<3x32x32xf32, #tpu.memory_space<vmem>>, vector<1x32x32xf32>
    %157 = vector.shape_cast %156 : vector<1x32x32xf32> to vector<32x32xf32>
    %158 = arith.truncf %155 : vector<8x32xf32> to vector<8x32xbf16>
    %159 = arith.truncf %157 : vector<32x32xf32> to vector<32x32xbf16>
    %cst_79 = arith.constant dense<0.000000e+00> : vector<8x32xf32>
    %160 = tpu.matmul %158, %159, %cst_79 {dimension_numbers = #tpu.dot_dimension_numbers<[1], [0], [0], [1], [0, 0, 1, 1], [], []>} : vector<8x32xbf16>, vector<32x32xbf16>, vector<8x32xf32> -> vector<8x32xf32>
    %c1_80 = arith.constant 1 : index
    %c0_81 = arith.constant 0 : index
    %c0_82 = arith.constant 0 : index
    %161 = vector.load %arg10[%c1_80, %c0_81, %c0_82] : memref<3x1x32xf32, #tpu.memory_space<vmem>>, vector<1x1x32xf32>
    %162 = vector.shape_cast %161 : vector<1x1x32xf32> to vector<1x32xf32>
    %163 = vector.broadcast %162 : vector<1x32xf32> to vector<8x32xf32>
    %164 = arith.addf %160, %163 : vector<8x32xf32>
    %c2 = arith.constant 2 : index
    %165 = memref.load %arg0[%c2] : memref<8xf32, #tpu.memory_space<smem>>
    %c5 = arith.constant 5 : index
    %166 = memref.load %arg0[%c5] : memref<8xf32, #tpu.memory_space<smem>>
    %c2_83 = arith.constant 2 : index
    %c0_84 = arith.constant 0 : index
    %c0_85 = arith.constant 0 : index
    %167 = vector.load %arg1[%c2_83, %c0_84, %c0_85] : memref<3x8x8xf32, #tpu.memory_space<vmem>>, vector<1x8x8xf32>
    %168 = vector.shape_cast %167 : vector<1x8x8xf32> to vector<8x8xf32>
    %169 = arith.addf %168, %4 : vector<8x8xf32>
    %cst_86 = arith.constant dense<0.000000e+00> : vector<8xf32>
    %170 = vector.multi_reduction <add>, %169, %cst_86 [1] : vector<8x8xf32> to vector<8xf32>
    %171 = vector.shape_cast %170 : vector<8xf32> to vector<8x1xf32>
    %172 = math.rsqrt %171 : vector<8x1xf32>
    %c2_87 = arith.constant 2 : index
    %c0_88 = arith.constant 0 : index
    %c0_89 = arith.constant 0 : index
    %173 = vector.load %arg2[%c2_87, %c0_88, %c0_89] : memref<3x8x16xf32, #tpu.memory_space<vmem>>, vector<1x8x16xf32>
    %174 = vector.shape_cast %173 : vector<1x8x16xf32> to vector<8x16xf32>
    %175 = vector.broadcast %172 : vector<8x1xf32> to vector<8x16xf32>
    %176 = arith.mulf %175, %174 : vector<8x16xf32>
    %177 = arith.truncf %169 : vector<8x8xf32> to vector<8x8xbf16>
    %178 = arith.truncf %176 : vector<8x16xf32> to vector<8x16xbf16>
    %cst_90 = arith.constant dense<0.000000e+00> : vector<8x16xf32>
    %179 = tpu.matmul %177, %178, %cst_90 {dimension_numbers = #tpu.dot_dimension_numbers<[1], [0], [0], [1], [0, 0, 1, 1], [], []>} : vector<8x8xbf16>, vector<8x16xbf16>, vector<8x16xf32> -> vector<8x16xf32>
    %180 = vector.broadcast %172 : vector<8x1xf32> to vector<8x16xf32>
    %181 = arith.mulf %180, %179 : vector<8x16xf32>
    %c2_91 = arith.constant 2 : index
    %c0_92 = arith.constant 0 : index
    %c0_93 = arith.constant 0 : index
    %182 = vector.load %arg3[%c2_91, %c0_92, %c0_93] : memref<3x16x512xf32, #tpu.memory_space<vmem>>, vector<1x16x512xf32>
    %183 = vector.shape_cast %182 : vector<1x16x512xf32> to vector<16x512xf32>
    %184 = arith.truncf %181 : vector<8x16xf32> to vector<8x16xbf16>
    %185 = arith.truncf %183 : vector<16x512xf32> to vector<16x512xbf16>
    %cst_94 = arith.constant dense<0.000000e+00> : vector<8x512xf32>
    %186 = tpu.matmul %184, %185, %cst_94 {dimension_numbers = #tpu.dot_dimension_numbers<[1], [0], [0], [1], [0, 0, 1, 1], [], []>} : vector<8x16xbf16>, vector<16x512xbf16>, vector<8x512xf32> -> vector<8x512xf32>
    %c2_95 = arith.constant 2 : index
    %c0_96 = arith.constant 0 : index
    %c0_97 = arith.constant 0 : index
    %187 = vector.load %arg4[%c2_95, %c0_96, %c0_97] : memref<3x1x512xf32, #tpu.memory_space<vmem>>, vector<1x1x512xf32>
    %188 = vector.shape_cast %187 : vector<1x1x512xf32> to vector<1x512xf32>
    %189 = vector.broadcast %188 : vector<1x512xf32> to vector<8x512xf32>
    %190 = arith.addf %186, %189 : vector<8x512xf32>
    %cst_98 = arith.constant 0.000000e+00 : f32
    %191 = vector.broadcast %cst_98 : f32 to vector<8x512xf32>
    %192 = arith.cmpf ogt, %190, %191 : vector<8x512xf32>
    %193 = vector.broadcast %165 : f32 to vector<8x512xf32>
    %194 = arith.mulf %193, %190 : vector<8x512xf32>
    %195 = arith.select %192, %190, %194 : vector<8x512xi1>, vector<8x512xf32>
    %c2_99 = arith.constant 2 : index
    %c0_100 = arith.constant 0 : index
    %c0_101 = arith.constant 0 : index
    %196 = vector.load %arg5[%c2_99, %c0_100, %c0_101] : memref<3x512x32xf32, #tpu.memory_space<vmem>>, vector<1x512x32xf32>
    %197 = vector.shape_cast %196 : vector<1x512x32xf32> to vector<512x32xf32>
    %198 = arith.truncf %195 : vector<8x512xf32> to vector<8x512xbf16>
    %199 = arith.truncf %197 : vector<512x32xf32> to vector<512x32xbf16>
    %cst_102 = arith.constant dense<0.000000e+00> : vector<8x32xf32>
    %200 = tpu.matmul %198, %199, %cst_102 {dimension_numbers = #tpu.dot_dimension_numbers<[1], [0], [0], [1], [0, 0, 1, 1], [], []>} : vector<8x512xbf16>, vector<512x32xbf16>, vector<8x32xf32> -> vector<8x32xf32>
    %c2_103 = arith.constant 2 : index
    %c0_104 = arith.constant 0 : index
    %c0_105 = arith.constant 0 : index
    %201 = vector.load %arg6[%c2_103, %c0_104, %c0_105] : memref<3x1x32xf32, #tpu.memory_space<vmem>>, vector<1x1x32xf32>
    %202 = vector.shape_cast %201 : vector<1x1x32xf32> to vector<1x32xf32>
    %203 = vector.broadcast %202 : vector<1x32xf32> to vector<8x32xf32>
    %204 = arith.addf %200, %203 : vector<8x32xf32>
    %c2_106 = arith.constant 2 : index
    %c0_107 = arith.constant 0 : index
    %c0_108 = arith.constant 0 : index
    %205 = vector.load %arg7[%c2_106, %c0_107, %c0_108] : memref<3x1x32xf32, #tpu.memory_space<vmem>>, vector<1x1x32xf32>
    %206 = vector.shape_cast %205 : vector<1x1x32xf32> to vector<1x32xf32>
    %c2_109 = arith.constant 2 : index
    %c0_110 = arith.constant 0 : index
    %c0_111 = arith.constant 0 : index
    %207 = vector.load %arg8[%c2_109, %c0_110, %c0_111] : memref<3x1x32xf32, #tpu.memory_space<vmem>>, vector<1x1x32xf32>
    %208 = vector.shape_cast %207 : vector<1x1x32xf32> to vector<1x32xf32>
    %cst_112 = arith.constant dense<0.000000e+00> : vector<32xf32>
    %209 = vector.multi_reduction <add>, %204, %cst_112 [0] : vector<8x32xf32> to vector<32xf32>
    %210 = vector.shape_cast %209 : vector<32xf32> to vector<1x32xf32>
    %cst_113 = arith.constant 1.250000e-01 : f32
    %211 = vector.broadcast %cst_113 : f32 to vector<1x32xf32>
    %212 = arith.mulf %210, %211 : vector<1x32xf32>
    %213 = arith.mulf %204, %204 : vector<8x32xf32>
    %cst_114 = arith.constant dense<0.000000e+00> : vector<32xf32>
    %214 = vector.multi_reduction <add>, %213, %cst_114 [0] : vector<8x32xf32> to vector<32xf32>
    %215 = vector.shape_cast %214 : vector<32xf32> to vector<1x32xf32>
    %cst_115 = arith.constant 1.250000e-01 : f32
    %216 = vector.broadcast %cst_115 : f32 to vector<1x32xf32>
    %217 = arith.mulf %215, %216 : vector<1x32xf32>
    %218 = arith.mulf %212, %212 : vector<1x32xf32>
    %219 = arith.subf %217, %218 : vector<1x32xf32>
    %220 = vector.broadcast %212 : vector<1x32xf32> to vector<8x32xf32>
    %221 = arith.subf %204, %220 : vector<8x32xf32>
    %cst_116 = arith.constant 9.99999974E-6 : f32
    %222 = vector.broadcast %cst_116 : f32 to vector<1x32xf32>
    %223 = arith.addf %219, %222 : vector<1x32xf32>
    %224 = math.rsqrt %223 : vector<1x32xf32>
    %225 = vector.broadcast %224 : vector<1x32xf32> to vector<8x32xf32>
    %226 = arith.mulf %221, %225 : vector<8x32xf32>
    %227 = vector.broadcast %206 : vector<1x32xf32> to vector<8x32xf32>
    %228 = arith.mulf %226, %227 : vector<8x32xf32>
    %229 = vector.broadcast %208 : vector<1x32xf32> to vector<8x32xf32>
    %230 = arith.addf %228, %229 : vector<8x32xf32>
    %cst_117 = arith.constant 0.000000e+00 : f32
    %231 = vector.broadcast %cst_117 : f32 to vector<8x32xf32>
    %232 = arith.cmpf ogt, %230, %231 : vector<8x32xf32>
    %233 = vector.broadcast %166 : f32 to vector<8x32xf32>
    %234 = arith.mulf %233, %230 : vector<8x32xf32>
    %235 = arith.select %232, %230, %234 : vector<8x32xi1>, vector<8x32xf32>
    %c2_118 = arith.constant 2 : index
    %c0_119 = arith.constant 0 : index
    %c0_120 = arith.constant 0 : index
    %236 = vector.load %arg9[%c2_118, %c0_119, %c0_120] : memref<3x32x32xf32, #tpu.memory_space<vmem>>, vector<1x32x32xf32>
    %237 = vector.shape_cast %236 : vector<1x32x32xf32> to vector<32x32xf32>
    %238 = arith.truncf %235 : vector<8x32xf32> to vector<8x32xbf16>
    %239 = arith.truncf %237 : vector<32x32xf32> to vector<32x32xbf16>
    %cst_121 = arith.constant dense<0.000000e+00> : vector<8x32xf32>
    %240 = tpu.matmul %238, %239, %cst_121 {dimension_numbers = #tpu.dot_dimension_numbers<[1], [0], [0], [1], [0, 0, 1, 1], [], []>} : vector<8x32xbf16>, vector<32x32xbf16>, vector<8x32xf32> -> vector<8x32xf32>
    %c2_122 = arith.constant 2 : index
    %c0_123 = arith.constant 0 : index
    %c0_124 = arith.constant 0 : index
    %241 = vector.load %arg10[%c2_122, %c0_123, %c0_124] : memref<3x1x32xf32, #tpu.memory_space<vmem>>, vector<1x1x32xf32>
    %242 = vector.shape_cast %241 : vector<1x1x32xf32> to vector<1x32xf32>
    %243 = vector.broadcast %242 : vector<1x32xf32> to vector<8x32xf32>
    %244 = arith.addf %240, %243 : vector<8x32xf32>
    %c6 = arith.constant 6 : index
    %245 = memref.load %arg0[%c6] : memref<8xf32, #tpu.memory_space<smem>>
    %c7 = arith.constant 7 : index
    %246 = memref.load %arg0[%c7] : memref<8xf32, #tpu.memory_space<smem>>
    %c0_125 = arith.constant 0 : index
    %c0_126 = arith.constant 0 : index
    %247 = vector.load %arg11[%c0_125, %c0_126] : memref<32x32xf32, #tpu.memory_space<vmem>>, vector<32x32xf32>
    %248 = arith.truncf %84 : vector<8x32xf32> to vector<8x32xbf16>
    %249 = arith.truncf %247 : vector<32x32xf32> to vector<32x32xbf16>
    %cst_127 = arith.constant dense<0.000000e+00> : vector<8x32xf32>
    %250 = tpu.matmul %248, %249, %cst_127 {dimension_numbers = #tpu.dot_dimension_numbers<[1], [0], [0], [1], [0, 0, 1, 1], [], []>} : vector<8x32xbf16>, vector<32x32xbf16>, vector<8x32xf32> -> vector<8x32xf32>
    %c0_128 = arith.constant 0 : index
    %c0_129 = arith.constant 0 : index
    %251 = vector.load %arg12[%c0_128, %c0_129] : memref<1x32xf32, #tpu.memory_space<vmem>>, vector<1x32xf32>
    %252 = vector.broadcast %251 : vector<1x32xf32> to vector<8x32xf32>
    %253 = arith.addf %250, %252 : vector<8x32xf32>
    %c0_130 = arith.constant 0 : index
    %c0_131 = arith.constant 0 : index
    %254 = vector.load %arg13[%c0_130, %c0_131] : memref<1x32xf32, #tpu.memory_space<vmem>>, vector<1x32xf32>
    %c0_132 = arith.constant 0 : index
    %c0_133 = arith.constant 0 : index
    %255 = vector.load %arg14[%c0_132, %c0_133] : memref<1x32xf32, #tpu.memory_space<vmem>>, vector<1x32xf32>
    %cst_134 = arith.constant dense<0.000000e+00> : vector<32xf32>
    %256 = vector.multi_reduction <add>, %253, %cst_134 [0] : vector<8x32xf32> to vector<32xf32>
    %257 = vector.shape_cast %256 : vector<32xf32> to vector<1x32xf32>
    %cst_135 = arith.constant 1.250000e-01 : f32
    %258 = vector.broadcast %cst_135 : f32 to vector<1x32xf32>
    %259 = arith.mulf %257, %258 : vector<1x32xf32>
    %260 = arith.mulf %253, %253 : vector<8x32xf32>
    %cst_136 = arith.constant dense<0.000000e+00> : vector<32xf32>
    %261 = vector.multi_reduction <add>, %260, %cst_136 [0] : vector<8x32xf32> to vector<32xf32>
    %262 = vector.shape_cast %261 : vector<32xf32> to vector<1x32xf32>
    %cst_137 = arith.constant 1.250000e-01 : f32
    %263 = vector.broadcast %cst_137 : f32 to vector<1x32xf32>
    %264 = arith.mulf %262, %263 : vector<1x32xf32>
    %265 = arith.mulf %259, %259 : vector<1x32xf32>
    %266 = arith.subf %264, %265 : vector<1x32xf32>
    %267 = vector.broadcast %259 : vector<1x32xf32> to vector<8x32xf32>
    %268 = arith.subf %253, %267 : vector<8x32xf32>
    %cst_138 = arith.constant 9.99999974E-6 : f32
    %269 = vector.broadcast %cst_138 : f32 to vector<1x32xf32>
    %270 = arith.addf %266, %269 : vector<1x32xf32>
    %271 = math.rsqrt %270 : vector<1x32xf32>
    %272 = vector.broadcast %271 : vector<1x32xf32> to vector<8x32xf32>
    %273 = arith.mulf %268, %272 : vector<8x32xf32>
    %274 = vector.broadcast %254 : vector<1x32xf32> to vector<8x32xf32>
    %275 = arith.mulf %273, %274 : vector<8x32xf32>
    %276 = vector.broadcast %255 : vector<1x32xf32> to vector<8x32xf32>
    %277 = arith.addf %275, %276 : vector<8x32xf32>
    %cst_139 = arith.constant 0.000000e+00 : f32
    %278 = vector.broadcast %cst_139 : f32 to vector<8x32xf32>
    %279 = arith.cmpf ogt, %277, %278 : vector<8x32xf32>
    %280 = vector.broadcast %245 : f32 to vector<8x32xf32>
    %281 = arith.mulf %280, %277 : vector<8x32xf32>
    %282 = arith.select %279, %277, %281 : vector<8x32xi1>, vector<8x32xf32>
    %c0_140 = arith.constant 0 : index
    %c0_141 = arith.constant 0 : index
    %283 = vector.load %arg15[%c0_140, %c0_141] : memref<32x32xf32, #tpu.memory_space<vmem>>, vector<32x32xf32>
    %284 = arith.truncf %282 : vector<8x32xf32> to vector<8x32xbf16>
    %285 = arith.truncf %283 : vector<32x32xf32> to vector<32x32xbf16>
    %cst_142 = arith.constant dense<0.000000e+00> : vector<8x32xf32>
    %286 = tpu.matmul %284, %285, %cst_142 {dimension_numbers = #tpu.dot_dimension_numbers<[1], [0], [0], [1], [0, 0, 1, 1], [], []>} : vector<8x32xbf16>, vector<32x32xbf16>, vector<8x32xf32> -> vector<8x32xf32>
    %c0_143 = arith.constant 0 : index
    %c0_144 = arith.constant 0 : index
    %287 = vector.load %arg16[%c0_143, %c0_144] : memref<1x32xf32, #tpu.memory_space<vmem>>, vector<1x32xf32>
    %288 = vector.broadcast %287 : vector<1x32xf32> to vector<8x32xf32>
    %289 = arith.addf %286, %288 : vector<8x32xf32>
    %c0_145 = arith.constant 0 : index
    %c0_146 = arith.constant 0 : index
    %290 = vector.load %arg17[%c0_145, %c0_146] : memref<8x32xf32, #tpu.memory_space<vmem>>, vector<8x32xf32>
    %291 = arith.mulf %290, %164 : vector<8x32xf32>
    %cst_147 = arith.constant 1.000000e+00 : f32
    %292 = vector.broadcast %cst_147 : f32 to vector<8x32xf32>
    %293 = arith.subf %292, %290 : vector<8x32xf32>
    %294 = arith.mulf %293, %244 : vector<8x32xf32>
    %295 = arith.addf %291, %294 : vector<8x32xf32>
    %296 = arith.mulf %289, %289 : vector<8x32xf32>
    %cst_148 = arith.constant dense<0.000000e+00> : vector<8xf32>
    %297 = vector.multi_reduction <add>, %296, %cst_148 [1] : vector<8x32xf32> to vector<8xf32>
    %298 = vector.shape_cast %297 : vector<8xf32> to vector<8x1xf32>
    %cst_149 = arith.constant 1.000000e-24 : f32
    %299 = vector.broadcast %cst_149 : f32 to vector<8x1xf32>
    %300 = arith.addf %298, %299 : vector<8x1xf32>
    %301 = math.rsqrt %300 : vector<8x1xf32>
    %302 = vector.broadcast %301 : vector<8x1xf32> to vector<8x32xf32>
    %303 = arith.mulf %289, %302 : vector<8x32xf32>
    %304 = arith.mulf %164, %164 : vector<8x32xf32>
    %cst_150 = arith.constant dense<0.000000e+00> : vector<8xf32>
    %305 = vector.multi_reduction <add>, %304, %cst_150 [1] : vector<8x32xf32> to vector<8xf32>
    %306 = vector.shape_cast %305 : vector<8xf32> to vector<8x1xf32>
    %cst_151 = arith.constant 1.000000e-24 : f32
    %307 = vector.broadcast %cst_151 : f32 to vector<8x1xf32>
    %308 = arith.addf %306, %307 : vector<8x1xf32>
    %309 = math.rsqrt %308 : vector<8x1xf32>
    %310 = vector.broadcast %309 : vector<8x1xf32> to vector<8x32xf32>
    %311 = arith.mulf %164, %310 : vector<8x32xf32>
    %312 = arith.mulf %244, %244 : vector<8x32xf32>
    %cst_152 = arith.constant dense<0.000000e+00> : vector<8xf32>
    %313 = vector.multi_reduction <add>, %312, %cst_152 [1] : vector<8x32xf32> to vector<8xf32>
    %314 = vector.shape_cast %313 : vector<8xf32> to vector<8x1xf32>
    %cst_153 = arith.constant 1.000000e-24 : f32
    %315 = vector.broadcast %cst_153 : f32 to vector<8x1xf32>
    %316 = arith.addf %314, %315 : vector<8x1xf32>
    %317 = math.rsqrt %316 : vector<8x1xf32>
    %318 = vector.broadcast %317 : vector<8x1xf32> to vector<8x32xf32>
    %319 = arith.mulf %244, %318 : vector<8x32xf32>
    %320 = arith.mulf %295, %295 : vector<8x32xf32>
    %cst_154 = arith.constant dense<0.000000e+00> : vector<8xf32>
    %321 = vector.multi_reduction <add>, %320, %cst_154 [1] : vector<8x32xf32> to vector<8xf32>
    %322 = vector.shape_cast %321 : vector<8xf32> to vector<8x1xf32>
    %cst_155 = arith.constant 1.000000e-24 : f32
    %323 = vector.broadcast %cst_155 : f32 to vector<8x1xf32>
    %324 = arith.addf %322, %323 : vector<8x1xf32>
    %325 = math.rsqrt %324 : vector<8x1xf32>
    %326 = vector.broadcast %325 : vector<8x1xf32> to vector<8x32xf32>
    %327 = arith.mulf %295, %326 : vector<8x32xf32>
    %328 = tpu.concatenate %311, %319, %327 in 0 : vector<8x32xf32>, vector<8x32xf32>, vector<8x32xf32> -> vector<24x32xf32>
    %329 = arith.truncf %303 : vector<8x32xf32> to vector<8x32xbf16>
    %330 = arith.truncf %328 : vector<24x32xf32> to vector<24x32xbf16>
    %cst_156 = arith.constant dense<0.000000e+00> : vector<8x24xf32>
    %331 = tpu.matmul %329, %330, %cst_156 {dimension_numbers = #tpu.dot_dimension_numbers<[1], [1], [0], [0], [0, 0, 1, 0], [], []>} : vector<8x32xbf16>, vector<24x32xbf16>, vector<8x24xf32> -> vector<8x24xf32>
    %332 = math.exp %331 : vector<8x24xf32>
    %333 = vector.extract_strided_slice %332 {offsets = [0, 0], sizes = [8, 8], strides = [1, 1]} : vector<8x24xf32> to vector<8x8xf32>
    %cst_157 = arith.constant dense<0.000000e+00> : vector<8xf32>
    %334 = vector.multi_reduction <add>, %333, %cst_157 [1] : vector<8x8xf32> to vector<8xf32>
    %335 = vector.shape_cast %334 : vector<8xf32> to vector<8x1xf32>
    %336 = vector.extract_strided_slice %332 {offsets = [0, 8], sizes = [8, 8], strides = [1, 1]} : vector<8x24xf32> to vector<8x8xf32>
    %cst_158 = arith.constant dense<0.000000e+00> : vector<8xf32>
    %337 = vector.multi_reduction <add>, %336, %cst_158 [1] : vector<8x8xf32> to vector<8xf32>
    %338 = vector.shape_cast %337 : vector<8xf32> to vector<8x1xf32>
    %339 = vector.extract_strided_slice %332 {offsets = [0, 16], sizes = [8, 8], strides = [1, 1]} : vector<8x24xf32> to vector<8x8xf32>
    %cst_159 = arith.constant dense<0.000000e+00> : vector<8xf32>
    %340 = vector.multi_reduction <add>, %339, %cst_159 [1] : vector<8x8xf32> to vector<8xf32>
    %341 = vector.shape_cast %340 : vector<8xf32> to vector<8x1xf32>
    %342 = arith.mulf %303, %311 : vector<8x32xf32>
    %cst_160 = arith.constant dense<0.000000e+00> : vector<8xf32>
    %343 = vector.multi_reduction <add>, %342, %cst_160 [1] : vector<8x32xf32> to vector<8xf32>
    %344 = vector.shape_cast %343 : vector<8xf32> to vector<8x1xf32>
    %345 = arith.mulf %303, %319 : vector<8x32xf32>
    %cst_161 = arith.constant dense<0.000000e+00> : vector<8xf32>
    %346 = vector.multi_reduction <add>, %345, %cst_161 [1] : vector<8x32xf32> to vector<8xf32>
    %347 = vector.shape_cast %346 : vector<8xf32> to vector<8x1xf32>
    %348 = arith.mulf %303, %327 : vector<8x32xf32>
    %cst_162 = arith.constant dense<0.000000e+00> : vector<8xf32>
    %349 = vector.multi_reduction <add>, %348, %cst_162 [1] : vector<8x32xf32> to vector<8xf32>
    %350 = vector.shape_cast %349 : vector<8xf32> to vector<8x1xf32>
    %351 = math.log %335 : vector<8x1xf32>
    %352 = arith.subf %351, %344 : vector<8x1xf32>
    %353 = math.log %338 : vector<8x1xf32>
    %354 = arith.subf %353, %347 : vector<8x1xf32>
    %355 = math.log %341 : vector<8x1xf32>
    %356 = arith.subf %355, %350 : vector<8x1xf32>
    %357 = arith.addf %352, %354 : vector<8x1xf32>
    %358 = vector.broadcast %246 : f32 to vector<8x1xf32>
    %359 = arith.mulf %358, %357 : vector<8x1xf32>
    %cst_163 = arith.constant 2.000000e+00 : f32
    %360 = arith.mulf %cst_163, %246 : f32
    %cst_164 = arith.constant 1.000000e+00 : f32
    %361 = arith.subf %cst_164, %360 : f32
    %362 = vector.broadcast %361 : f32 to vector<8x1xf32>
    %363 = arith.mulf %362, %356 : vector<8x1xf32>
    %364 = arith.addf %359, %363 : vector<8x1xf32>
    %365 = vector.shape_cast %364 : vector<8x1xf32> to vector<1x8x1xf32>
    %cst_165 = arith.constant dense<0.000000e+00> : vector<1xf32>
    %366 = vector.multi_reduction <add>, %365, %cst_165 [1, 2] : vector<1x8x1xf32> to vector<1xf32>
    %367 = vector.shape_cast %366 : vector<1xf32> to vector<1x1x1xf32>
    %368 = vector.extract %367[0, 0, 0] : f32 from vector<1x1x1xf32>
    %cst_166 = arith.constant 1.250000e-01 : f32
    %369 = arith.mulf %368, %cst_166 : f32
    %c0_167 = arith.constant 0 : index
    %c0_168 = arith.constant 0 : index
    %370 = memref.load %arg18[%c0_167, %c0_168] : memref<1x1xf32, #tpu.memory_space<smem>>
    memref.store %369, %arg18[%c0_167, %c0_168] : memref<1x1xf32, #tpu.memory_space<smem>>
    return
  }
}

</mosaic_0001>

<bundles_post_ra>
// kernel: gtcln_forward.1
= control target key start
LH: loop header
LB: loop body
LE: loop exit
PB: predicated region body
PF: predicated region fallthrough
CT: control target
= control target key end

     0   :  { %s3410_s0 = inlined_call_operand.vmem [shape: f32[8], index: 0, kind: input, shape index: {}]   ;;  %s3411_s1 = inlined_call_operand.vmem [shape: f32[3,8,8], index: 1, kind: input, shape index: {}]   ;;  %s3412_s2 = inlined_call_operand.vmem [shape: f32[3,8,16], index: 2, kind: input, shape index: {}]   ;;  %s3413_s3 = inlined_call_operand.vmem [shape: f32[3,16,512], index: 3, kind: input, shape index: {}]   ;;  %s3414_s4 = inlined_call_operand.vmem [shape: f32[3,1,512], index: 4, kind: input, shape index: {}]   ;;  %s3415_s5 = inlined_call_operand.vmem [shape: f32[3,512,32], index: 5, kind: input, shape index: {}]   ;;  %s3416_s6 = inlined_call_operand.vmem [shape: f32[3,1,32], index: 6, kind: input, shape index: {}]   ;;  %s3417_s7 = inlined_call_operand.vmem [shape: f32[3,1,32], index: 7, kind: input, shape index: {}]   ;;  %s3418_s8 = inlined_call_operand.vmem [shape: f32[3,1,32], index: 8, kind: input, shape index: {}]   ;;  %s3419_s9 = inlined_call_operand.vmem [shape: f32[3,32,32], index: 9, kind: input, shape index: {}]   ;;  %s3420_s10 = inlined_call_operand.vmem [shape: f32[3,1,32], index: 10, kind: input, shape index: {}]   ;;  %s3421_s11 = inlined_call_operand.vmem [shape: f32[32,32], index: 11, kind: input, shape index: {}]   ;;  %s3422_s12 = inlined_call_operand.vmem [shape: f32[1,32], index: 12, kind: input, shape index: {}]   ;;  %s3423_s13 = inlined_call_operand.vmem [shape: f32[1,32], index: 13, kind: input, shape index: {}]   ;;  %s3424_s14 = inlined_call_operand.vmem [shape: f32[1,32], index: 14, kind: input, shape index: {}]   ;;  %s3425_s15 = inlined_call_operand.vmem [shape: f32[32,32], index: 15, kind: input, shape index: {}]   ;;  %s3426_s16 = inlined_call_operand.vmem [shape: f32[1,32], index: 16, kind: input, shape index: {}]   ;;  %s3427_s17 = inlined_call_operand.vmem [shape: f32[8,32], index: 17, kind: input, shape index: {}]   ;;  %s3428_s18 = inlined_call_operand.hbm [shape: f32[1,1], index: 18, kind: output, shape index: {}]  }
   0x1   :  { %3431 = sst [smem:[#allocation8_spill]] %s3410_s0 }
   0x2   :  { %3432 = sst [smem:[#allocation9_spill]] %s3411_s1 }
   0x3   :  { %3433 = sst [smem:[#allocation10_spill]] %s3412_s2 }
   0x4   :  { %23 = vsyncpa [#allocation4], 0 }
   0x5   :  { %24 = vsyncpa [#allocation3], 0  ;;  %s3434_s29 = sld [smem:[#allocation8_spill]] }
   0xb   :  { %s31_s30 = sshll.u32 %s3434_s29, 4  ;;  %s32_s30 = int_to_ptr.vmem [resolvable:$true] %s31_s30 }
   0xc   :  { %s2327_s0 = scalar_lea.vmem %s32_s30, 16  ;;  %p2332_p1 = scmp.lt.s32.totalorder %s32_s30, %s32_s30 }
   0xd   :  { %p2328_p0 = scmp.ne.s32.totalorder %s32_s30, %s2327_s0  ;;  %p2333_p2 = scmp.lt.s32.totalorder %s2327_s0, %s2327_s0 }
   0xf   :  { %p2334_p3 = por %p2333_p2, %p2332_p1 }
  0x11   :  { %p2335_p4 = pnand %p2334_p3, %p2328_p0 }
  0x13   :  { %2338 = shalt.err (!%p2335_p4)
}
  0x14   :  { %s2353_s19 = smov [#allocation2]  }
  0x15   :  { %34 = dma.vmem_to_smem %s32_s30, 16, %s2353_s19, [#allocation4]  }
  0x16   :  { %2349 = dma.done.wait [#allocation4], 16  }
  0x17   :  { %2350 = vsyncadd [#allocation4], 4294967280 }
  0x18   :  { %72 = sfence }
  0x19   :  { %v74_v0 = vlaneseq  ;;  %v2354_v1 = vmov 0.0   ;;  %s3435_s21 = sld [smem:[#allocation9_spill]]  ;;  %vm85_vm1 = vcmask 64512   ;;  %vm2355_vm2 = vmmov 0   ;;  %s3436_s23 = sld [smem:[#allocation10_spill]]  ;;  %v143_v11 = vld [vmem:[%s3413_s3 + $0x8] sm:$0xff] }
  0x1a   :  { %2222 = vmatprep.subr.bf16.mxu1 %v2354_v1  ;;  %2224 = vmatprep.mubr.msk.bf16.mxu1 %vm2355_vm2, %v2354_v1  ;;  %v147_v12 = vld [vmem:[%s3413_s3 + $0x28] sm:$0xff]  ;;  %vm97_vm3 = vcmask 1043456   ;;  %v142_v16 = vld [vmem:[%s3413_s3] sm:$0xff]  ;;  %v145_v21 = vld [vmem:[%s3413_s3 + $0x18] sm:$0xff]  ;;  %v2356_v27 = vmov 0   ;;  %vm177_vm4 = vcmask 130048  }
  0x1b   :  { %v2459_v2 = vshrl.u32 %v74_v0, 7  ;;  %v77_v3 = vand.u32 127, %v74_v0  ;;  %v152_v15 = vpack.c.bf16 %v147_v12, %v143_v11  ;;  %v146_v17 = vld [vmem:[%s3413_s3 + $0x20] sm:$0xff]  ;;  %v149_v22 = vld [vmem:[%s3413_s3 + $0x38] sm:$0xff]  ;;  %v144_v24 = vld [vmem:[%s3413_s3 + $0x10] sm:$0xff]  ;;  %254 = vmatprep.mubr.bf16.mxu0 %v2356_v27  ;;  %s81_s27 = sld [smem:[#allocation2]] }
  0x1c   :  { %v151_v20 = vpack.c.bf16 %v146_v17, %v142_v16  ;;  %v154_v23 = vpack.c.bf16 %v149_v22, %v145_v21  ;;  %v148_v25 = vld [vmem:[%s3413_s3 + $0x30] sm:$0xff]  ;;  %v292_v29 = vld [vmem:[%s3415_s5 + $0x80] sm:$0xff]  ;;  %v293_v30 = vld [vmem:[%s3415_s5 + $0x88] sm:$0xff]  ;;  %vm465_vm9 = vcmask 261120   ;;  %s1862_s22 = sld [smem:[#allocation2 + $0x3]]  ;;  %s1964_s20 = sld [smem:[#allocation2 + $0x2]] }
  0x1d   :  { %vm78_vm0 = vcmp.eq.s32.totalorder %v2459_v2, %v77_v3  ;;  %v153_v26 = vpack.c.bf16 %v148_v25, %v144_v24  ;;  %v352_v32 = vpack.c.bf16 %v293_v30, %v292_v29  ;;  %v324_v33 = vld [vmem:[%s3415_s5 + $0x180] sm:$0xff]  ;;  %v325_v34 = vld [vmem:[%s3415_s5 + $0x188] sm:$0xff]  ;;  %v294_v41 = vld [vmem:[%s3415_s5 + $0x90] sm:$0xff]  ;;  %s2058_s24 = sld [smem:[#allocation2 + $0x7]] }
  0x1e   :  { %v2466_v5 = vsel %vm78_vm0, 1.0, %v2354_v1  ;;  %222 = vmatprep.subr.bf16.mxu0 %v154_v23  ;;  %v368_v35 = vpack.c.bf16 %v325_v34, %v324_v33  ;;  %v276_v37 = vld [vmem:[%s3415_s5] sm:$0xff]  ;;  %v277_v38 = vld [vmem:[%s3415_s5 + $0x8] sm:$0xff]  ;;  %v295_v43 = vld [vmem:[%s3415_s5 + $0x98] sm:$0xff] }
  0x1f   :  { %v83_v4 = vld [vmem:[%s3435_s21] sm:$0xff]  ;;  %223 = vmatpush1.bf16.msra.mxu0 %v153_v26  ;;  %v1873_v28 = vld [vmem:[%s3435_s21 + $0x8] sm:$0xff]  ;;  %v326_v44 = vld [vmem:[%s3415_s5 + $0x190] sm:$0xff]  ;;  %v344_v49 = vpack.c.bf16 %v277_v38, %v276_v37  ;;  %v353_v55 = vpack.c.bf16 %v295_v43, %v294_v41 }
  0x20   :  { %v84_v6 = vadd.f32 %v2466_v5, %v83_v4  ;;  %v90_v9 = vld [vmem:[%s3436_s23] sm:$0xff]  ;;  %v2513_v31 = vadd.f32 %v1873_v28, %v2466_v5  ;;  %2090 = vmatprep.subr.bf16.mxu0 %v368_v35  ;;  %v309_v40 = vld [vmem:[%s3415_s5 + $0x108] sm:$0xff]  ;;  %v327_v45 = vld [vmem:[%s3415_s5 + $0x198] sm:$0xff] }
  0x21   :  { %v308_v39 = vld [vmem:[%s3415_s5 + $0x100] sm:$0xff]  ;;  %v278_v51 = vld [vmem:[%s3415_s5 + $0x10] sm:$0xff]  ;;  %v279_v52 = vld [vmem:[%s3415_s5 + $0x18] sm:$0xff]  ;;  %v369_v56 = vpack.c.bf16 %v327_v45, %v326_v44 }
  0x22   :  { %v86_v7 = vsel %vm85_vm1, %v84_v6, 0.0  ;;  %v92_v18 = vpack.c.bf16 %v84_v6, %v84_v6  ;;  %v569_v36 = vsel %vm85_vm1, %v2513_v31, 0.0  ;;  %v360_v50 = vpack.c.bf16 %v309_v40, %v308_v39  ;;  %v310_v57 = vld [vmem:[%s3415_s5 + $0x110] sm:$0xff]  ;;  %v311_v58 = vld [vmem:[%s3415_s5 + $0x118] sm:$0xff]  ;;  %v296_v59 = vld [vmem:[%s3415_s5 + $0xa0] sm:$0xff] }
  0x23   :  { %87 = vadd.xlane.f32.xlu0 %v86_v7  ;;  %v297_v60 = vld [vmem:[%s3415_s5 + $0xa8] sm:$0xff]  ;;  %v328_v61 = vld [vmem:[%s3415_s5 + $0x1a0] sm:$0xff]  ;;  %v345_v63 = vpack.c.bf16 %v279_v52, %v278_v51  ;;  %v361_v0 = vpack.c.bf16 %v311_v58, %v310_v57  ;;  %v299_v11 = vld [vmem:[%s3415_s5 + $0xb8] sm:$0xff] }
  0x24   :  { %v329_v62 = vld [vmem:[%s3415_s5 + $0x1a8] sm:$0xff]  ;;  %v280_v3 = vld [vmem:[%s3415_s5 + $0x20] sm:$0xff]  ;;  %v354_v6 = vpack.c.bf16 %v297_v60, %v296_v59  ;;  %v330_v12 = vld [vmem:[%s3415_s5 + $0x1b0] sm:$0xff] }
  0x25   :  { %v281_v4 = vld [vmem:[%s3415_s5 + $0x28] sm:$0xff]  ;;  %v370_v7 = vpack.c.bf16 %v329_v62, %v328_v61  ;;  %v282_v16 = vld [vmem:[%s3415_s5 + $0x30] sm:$0xff]  ;;  %v283_v17 = vld [vmem:[%s3415_s5 + $0x38] sm:$0xff] }
  0x26   :  { %v315_v21 = vld [vmem:[%s3415_s5 + $0x138] sm:$0xff]  ;;  %v300_v22 = vld [vmem:[%s3415_s5 + $0xc0] sm:$0xff]  ;;  %v301_v23 = vld [vmem:[%s3415_s5 + $0xc8] sm:$0xff]  ;;  %v347_v26 = vpack.c.bf16 %v283_v17, %v282_v16  ;;  %v2717_v17 = vsub.s32 1, %v2459_v2 }
  0x27   :  { %570 = vadd.xlane.f32.xlu0 %v569_v36  ;;  %v332_v24 = vld [vmem:[%s3415_s5 + $0x1c0] sm:$0xff]  ;;  %v333_v25 = vld [vmem:[%s3415_s5 + $0x1c8] sm:$0xff]  ;;  %v302_v36 = vld [vmem:[%s3415_s5 + $0xd0] sm:$0xff] }
  0x28   :  { %v284_v29 = vld [vmem:[%s3415_s5 + $0x40] sm:$0xff]  ;;  %v285_v30 = vld [vmem:[%s3415_s5 + $0x48] sm:$0xff]  ;;  %v372_v33 = vpack.c.bf16 %v333_v25, %v332_v24  ;;  %v303_v37 = vld [vmem:[%s3415_s5 + $0xd8] sm:$0xff] }
  0x29   :  { %v316_v34 = vld [vmem:[%s3415_s5 + $0x140] sm:$0xff]  ;;  %v317_v35 = vld [vmem:[%s3415_s5 + $0x148] sm:$0xff]  ;;  %v334_v38 = vld [vmem:[%s3415_s5 + $0x1d0] sm:$0xff]  ;;  %v348_v40 = vpack.c.bf16 %v285_v30, %v284_v29  ;;  %v357_v43 = vpack.c.bf16 %v303_v37, %v302_v36 }
  0x2a   :  { %v335_v39 = vld [vmem:[%s3415_s5 + $0x1d8] sm:$0xff]  ;;  %v364_v41 = vpack.c.bf16 %v317_v35, %v316_v34  ;;  %v305_v51 = vld [vmem:[%s3415_s5 + $0xe8] sm:$0xff]  ;;  %v336_v52 = vld [vmem:[%s3415_s5 + $0x1e0] sm:$0xff] }
  0x2b   :  { %v373_v44 = vpack.c.bf16 %v335_v39, %v334_v38  ;;  %v287_v45 = vld [vmem:[%s3415_s5 + $0x58] sm:$0xff]  ;;  %v320_v59 = vld [vmem:[%s3415_s5 + $0x160] sm:$0xff]  ;;  %v321_v60 = vld [vmem:[%s3415_s5 + $0x168] sm:$0xff] }
  0x2c   :  { %v366_v61 = vpack.c.bf16 %v321_v60, %v320_v59  ;;  %v306_v62 = vld [vmem:[%s3415_s5 + $0xf0] sm:$0xff]  ;;  %v155_v16 = vld [vmem:[%s3414_s4] sm:$0xf] }
  0x2d   :  { %v507_v60 = vld [vmem:[%s3419_s9] sm:$0xff] }
  0xb0   :  { %v88_v8 = vpop.xlane.xlu0 %87 }
  0xb1   :  { %2297 = vrsqrt.f32 %v88_v8  ;;  %v312_v8 = vld [vmem:[%s3415_s5 + $0x120] sm:$0xff] }
  0xbb   :  { %v2298_v10 = vpop.eup %2297 }
  0xbc   :  { %v91_v13 = vmul.f32 %v2298_v10, %v90_v9  ;;  %v313_v9 = vld [vmem:[%s3415_s5 + $0x128] sm:$0xff] }
  0xbe   :  { %v93_v14 = vpack.c.bf16 %v91_v13, %v91_v13  ;;  %v331_v13 = vld [vmem:[%s3415_s5 + $0x1b8] sm:$0xff] }
  0xc0   :  { %v99_v19 = vsel %vm97_vm3, %v93_v14, 0  ;;  %v346_v14 = vpack.c.bf16 %v281_v4, %v280_v3  ;;  %v339_v4 = vld [vmem:[%s3415_s5 + $0x1f8] sm:$0xff] }
  0xc1   :  { %2223 = vmatpush3.bf16.msra.mxu1 %v99_v19  ;;  %v371_v19 = vpack.c.bf16 %v331_v13, %v330_v12  ;;  %v571_v13 = vpop.xlane.xlu0 %570 }
  0xc2   :  { %181 = vmatprep.subr.bf16.mxu1 %v152_v15  ;;  %v362_v15 = vpack.c.bf16 %v313_v9, %v312_v8  ;;  %2299 = vrsqrt.f32 %v571_v13 }
  0xc4   :  { %2225 = vmatmul.mubr.msk.bf16.vlgmr.msra.gmra.mrb[0].mxu1 %vm85_vm1, %v92_v18 }
  0xc5   :  { %182 = vmatpush1.bf16.msra.mxu1 %v151_v20  ;;  %213 = vmatprep.mubr.bf16.mxu1 %v2356_v27  ;;  %v314_v20 = vld [vmem:[%s3415_s5 + $0x130] sm:$0xff] }
  0xc6   :  { %2068 = vmatprep.subr.bf16.mxu1 %v352_v32  ;;  %v363_v28 = vpack.c.bf16 %v315_v21, %v314_v20  ;;  %v356_v32 = vpack.c.bf16 %v301_v23, %v300_v22  ;;  %v1874_v20 = vld [vmem:[%s3436_s23 + $0x8] sm:$0xff]  ;;  %v164_v23 = vrot.slane %v155_v16, %v2717_v17 }
 0x197   :  { %v135_v42 = vpop.f32.mrb[0].mxu1 }
 0x198   :  { %v141_v46 = vmul.f32 %v2298_v10, %v135_v42  ;;  %v2226_v47 = vpop.f32.mrb[1].mxu1  ;;  %v298_v10 = vld [vmem:[%s3415_s5 + $0xb0] sm:$0xff] }
 0x199   :  { %v138_v48 = vpop.f32.mrb[2].mxu1  ;;  %v355_v18 = vpack.c.bf16 %v299_v11, %v298_v10  ;;  %v286_v42 = vld [vmem:[%s3415_s5 + $0x50] sm:$0xff]  ;;  %v319_v47 = vld [vmem:[%s3415_s5 + $0x158] sm:$0xff] }
 0x19a   :  { %v150_v53 = vpack.c.bf16 %v141_v46, %v141_v46  ;;  %v2227_v54 = vpop.f32.mrb[3].mxu1  ;;  %v318_v46 = vld [vmem:[%s3415_s5 + $0x150] sm:$0xff]  ;;  %v349_v48 = vpack.c.bf16 %v287_v45, %v286_v42  ;;  %v323_v11 = vld [vmem:[%s3415_s5 + $0x178] sm:$0xff] }
 0x19b   :  { %v337_v54 = vld [vmem:[%s3415_s5 + $0x1e8] sm:$0xff]  ;;  %v322_v10 = vld [vmem:[%s3415_s5 + $0x170] sm:$0xff] }
 0x19c   :  { %1864 = vmatmul.mubr.msk.bf16.vlgmr.msra.gmra.mrb[4].mxu1 %vm177_vm4, %v150_v53  ;;  %1865 = vmatmul.mubr.msk.bf16.vlgmr.msra.gmra.mrb[0].mxu0 %vm177_vm4, %v150_v53  ;;  %v374_v57 = vpack.c.bf16 %v337_v54, %v336_v52  ;;  %v367_v12 = vpack.c.bf16 %v323_v11, %v322_v10  ;;  %v576_v54 = vpack.c.bf16 %v2513_v31, %v2513_v31  ;;  %v1882_v31 = vld [vmem:[%s3413_s3 + $0x70] sm:$0xff]  ;;  %v1936_v10 = vld [vmem:[%s3415_s5 + $0x388] sm:$0xff] }
 0x19d   :  { %2069 = vmatpush3.bf16.msra.mxu1 %v344_v49  ;;  %2091 = vmatpush3.bf16.msra.mxu0 %v360_v50  ;;  %v365_v49 = vpack.c.bf16 %v319_v47, %v318_v46  ;;  %v304_v50 = vld [vmem:[%s3415_s5 + $0xe0] sm:$0xff] }
 0x19e   :  { %2070 = vmatprep.subr.bf16.mxu1 %v353_v55  ;;  %2092 = vmatprep.subr.bf16.mxu0 %v369_v56  ;;  %v358_v53 = vpack.c.bf16 %v305_v51, %v304_v50  ;;  %v288_v55 = vld [vmem:[%s3415_s5 + $0x60] sm:$0xff]  ;;  %v289_v56 = vld [vmem:[%s3415_s5 + $0x68] sm:$0xff] }
 0x19f   :  { %v350_v58 = vpack.c.bf16 %v289_v56, %v288_v55  ;;  %v1879_v55 = vld [vmem:[%s3413_s3 + $0x58] sm:$0xff] }
 0x1a0   :  { %v1883_v56 = vld [vmem:[%s3413_s3 + $0x78] sm:$0xff] }
 0x1a1   :  { %2071 = vmatpush3.bf16.msra.mxu1 %v345_v63  ;;  %2093 = vmatpush3.bf16.msra.mxu0 %v361_v0  ;;  %v307_v63 = vld [vmem:[%s3415_s5 + $0xf8] sm:$0xff]  ;;  %v338_v0 = vld [vmem:[%s3415_s5 + $0x1f0] sm:$0xff] }
 0x1a2   :  { %2072 = vmatprep.subr.bf16.mxu1 %v354_v6  ;;  %2094 = vmatprep.subr.bf16.mxu0 %v370_v7  ;;  %v359_v3 = vpack.c.bf16 %v307_v63, %v306_v62  ;;  %v290_v6 = vld [vmem:[%s3415_s5 + $0x70] sm:$0xff]  ;;  %v291_v7 = vld [vmem:[%s3415_s5 + $0x78] sm:$0xff]  ;;  %v375_v8 = vpack.c.bf16 %v339_v4, %v338_v0 }
 0x1a3   :  { %v351_v9 = vpack.c.bf16 %v291_v7, %v290_v6  ;;  %v509_v63 = vld [vmem:[%s3419_s9 + $0x10] sm:$0xff]  ;;  %v510_v0 = vld [vmem:[%s3419_s9 + $0x18] sm:$0xff]  ;;  %v1881_v6 = vld [vmem:[%s3413_s3 + $0x68] sm:$0xff] }
 0x1a4   :  { %v513_v4 = vpack.c.bf16 %v510_v0, %v509_v63 }
 0x1a5   :  { %2073 = vmatpush3.bf16.msra.mxu1 %v346_v14  ;;  %2095 = vmatpush3.bf16.msra.mxu0 %v362_v15  ;;  %v2708_v14 = vsub.s32 0, %v2459_v2  ;;  %v2711_v15 = vsub.s32 2, %v2459_v2 }
 0x1a6   :  { %2074 = vmatprep.subr.bf16.mxu1 %v355_v18  ;;  %2096 = vmatprep.subr.bf16.mxu0 %v371_v19  ;;  %v2720_v18 = vsub.s32 3, %v2459_v2  ;;  %v2722_v19 = vpop.eup %2299 }
 0x1a7   :  { %v160_v21 = vrot.slane %v155_v16, %v2708_v14  ;;  %v168_v22 = vrot.slane %v155_v16, %v2711_v15  ;;  %v575_v25 = vmul.f32 %v2722_v19, %v1874_v20 }
 0x1a8   :  { %v172_v24 = vrot.slane %v155_v16, %v2720_v18 }
 0x1a9   :  { %2075 = vmatpush3.bf16.msra.mxu1 %v347_v26  ;;  %2097 = vmatpush3.bf16.msra.mxu0 %v363_v28  ;;  %v267_v28 = vstv %s81_s27  ;;  %v577_v38 = vpack.c.bf16 %v575_v25, %v575_v25  ;;  %s1871_s27 = sld [smem:[#allocation2 + $0x1]] }
 0x1aa   :  { %2076 = vmatprep.subr.bf16.mxu1 %v356_v32  ;;  %2098 = vmatprep.subr.bf16.mxu0 %v372_v33 }
 0x1ad   :  { %2077 = vmatpush3.bf16.msra.mxu1 %v348_v40  ;;  %2099 = vmatpush3.bf16.msra.mxu0 %v364_v41 }
 0x1ae   :  { %2078 = vmatprep.subr.bf16.mxu1 %v357_v43  ;;  %2100 = vmatprep.subr.bf16.mxu0 %v373_v44 }
 0x1b1   :  { %2079 = vmatpush3.bf16.msra.mxu1 %v349_v48  ;;  %2101 = vmatpush3.bf16.msra.mxu0 %v365_v49 }
 0x1b2   :  { %2080 = vmatprep.subr.bf16.mxu1 %v358_v53  ;;  %2102 = vmatprep.subr.bf16.mxu0 %v374_v57  ;;  %v582_v53 = vsel %vm97_vm3, %v577_v38, 0  ;;  %v1878_v57 = vld [vmem:[%s3413_s3 + $0x50] sm:$0xff]  ;;  %v1938_v38 = vld [vmem:[%s3415_s5 + $0x398] sm:$0xff] }
 0x1b3   :  { %v637_v59 = vpack.c.bf16 %v1882_v31, %v1878_v57 }
 0x1b5   :  { %2081 = vmatpush3.bf16.msra.mxu1 %v350_v58  ;;  %2103 = vmatpush3.bf16.msra.mxu0 %v366_v61  ;;  %v638_v58 = vpack.c.bf16 %v1883_v56, %v1879_v55  ;;  %v508_v61 = vld [vmem:[%s3419_s9 + $0x8] sm:$0xff] }
 0x1b6   :  { %2082 = vmatprep.subr.bf16.mxu1 %v359_v3  ;;  %2104 = vmatprep.subr.bf16.mxu0 %v375_v8  ;;  %v512_v62 = vpack.c.bf16 %v508_v61, %v507_v60  ;;  %v1877_v3 = vld [vmem:[%s3413_s3 + $0x48] sm:$0xff]  ;;  %v1966_v8 = vld [vmem:[%s3435_s21 + $0x10] sm:$0xff]  ;;  %v1942_v61 = vld [vmem:[%s3415_s5 + $0x3b8] sm:$0xff] }
 0x1b7   :  { %v636_v7 = vpack.c.bf16 %v1881_v6, %v1877_v3  ;;  %v2782_v11 = vadd.f32 %v1966_v8, %v2466_v5  ;;  %v1941_v60 = vld [vmem:[%s3415_s5 + $0x3b0] sm:$0xff]  ;;  %v1926_v8 = vld [vmem:[%s3415_s5 + $0x338] sm:$0xff] }
 0x1b8   :  { %v856_v6 = vpack.c.bf16 %v1942_v61, %v1941_v60  ;;  %v1887_v60 = vld [vmem:[%s3415_s5 + $0x200] sm:$0xff] }
 0x1b9   :  { %2083 = vmatpush3.bf16.msra.mxu1 %v351_v9  ;;  %2105 = vmatpush3.bf16.msra.mxu0 %v367_v12  ;;  %v1935_v9 = vld [vmem:[%s3415_s5 + $0x380] sm:$0xff]  ;;  %v1058_v13 = vsel %vm85_vm1, %v2782_v11, 0.0 }
 0x1ba   :  { %2228 = vmatprep.subr.bf16.mxu1 %v2354_v1  ;;  %2236 = vmatprep.subr.bf16.mxu0 %v2354_v1  ;;  %v853_v12 = vpack.c.bf16 %v1936_v10, %v1935_v9  ;;  %v1943_v9 = vld [vmem:[%s3415_s5 + $0x3c0] sm:$0xff]  ;;  %v1944_v10 = vld [vmem:[%s3415_s5 + $0x3c8] sm:$0xff] }
 0x1bb   :  { %1059 = vadd.xlane.f32.xlu1 %v1058_v13 }
 0x26f   :  { %v215_v26 = vpop.f32.mrb[4].mxu1  ;;  %v256_v2 = vpop.f32.mrb[0].mxu0 }
 0x270   :  { %v216_v29 = vadd.f32 %v215_v26, %v160_v21  ;;  %v257_v30 = vadd.f32 %v256_v2, %v168_v22  ;;  %v217_v32 = vpop.f32.mrb[5].mxu1  ;;  %v258_v33 = vpop.f32.mrb[1].mxu0  ;;  %v1866_v21 = vld [vmem:[%s3416_s6] ss:$0 sm:$0xff] }
 0x271   :  { %v218_v34 = vadd.f32 %v217_v32, %v164_v23  ;;  %v259_v35 = vadd.f32 %v258_v33, %v172_v24  ;;  %v219_v36 = vpop.f32.mrb[6].mxu1  ;;  %v260_v37 = vpop.f32.mrb[2].mxu0  ;;  %v1919_v32 = vld [vmem:[%s3415_s5 + $0x300] sm:$0xff]  ;;  %v1920_v33 = vld [vmem:[%s3415_s5 + $0x308] sm:$0xff] }
 0x272   :  { %vm263_vm5 = vcmp.gt.f32.partialorder %v216_v29, 0.0  ;;  %v268_v39 = vmul.f32 %v267_v28, %v216_v29  ;;  %vm265_vm6 = vcmp.gt.f32.partialorder %v257_v30, 0.0  ;;  %v270_v40 = vmul.f32 %v267_v28, %v257_v30  ;;  %v220_v41 = vpop.f32.mrb[7].mxu1  ;;  %v261_v42 = vpop.f32.mrb[3].mxu0  ;;  %v1937_v37 = vld [vmem:[%s3415_s5 + $0x390] sm:$0xff] }
 0x273   :  { %vm264_vm7 = vcmp.gt.f32.partialorder %v218_v34, 0.0  ;;  %v269_v43 = vmul.f32 %v267_v28, %v218_v34  ;;  %vm266_vm8 = vcmp.gt.f32.partialorder %v259_v35, 0.0  ;;  %v271_v44 = vmul.f32 %v267_v28, %v259_v35 }
 0x274   :  { %v272_v45 = vsel %vm263_vm5, %v216_v29, %v268_v39  ;;  %v274_v46 = vsel %vm265_vm6, %v257_v30, %v270_v40 }
 0x275   :  { %v273_v47 = vsel %vm264_vm7, %v218_v34, %v269_v43  ;;  %v275_v48 = vsel %vm266_vm8, %v259_v35, %v271_v44  ;;  %v340_v51 = vpack.c.bf16 %v272_v45, %v272_v45  ;;  %v342_v52 = vpack.c.bf16 %v274_v46, %v274_v46 }
 0x276   :  { %v341_v49 = vpack.c.bf16 %v273_v47, %v273_v47  ;;  %v343_v50 = vpack.c.bf16 %v275_v48, %v275_v48  ;;  %v845_v44 = vpack.c.bf16 %v1920_v33, %v1919_v32  ;;  %v1929_v32 = vld [vmem:[%s3415_s5 + $0x350] sm:$0xff]  ;;  %v1930_v33 = vld [vmem:[%s3415_s5 + $0x358] sm:$0xff] }
 0x278   :  { %415 = vmatprep.mubr.bf16.mxu1 %v341_v49  ;;  %455 = vmatprep.mubr.bf16.mxu0 %v343_v50  ;;  %v854_v49 = vpack.c.bf16 %v1938_v38, %v1937_v37  ;;  %v1921_v50 = vld [vmem:[%s3415_s5 + $0x310] sm:$0xff]  ;;  %v1867_v37 = vld [vmem:[%s3417_s7] ss:$0 sm:$0xff] }
 0x279   :  { %416 = vmatmul.mubr.bf16.vlgmr.msra.gmra.mrb[8].mxu1 %v340_v51  ;;  %456 = vmatmul.mubr.bf16.vlgmr.msra.gmra.mrb[4].mxu0 %v342_v52  ;;  %v1922_v51 = vld [vmem:[%s3415_s5 + $0x318] sm:$0xff]  ;;  %v1940_v52 = vld [vmem:[%s3415_s5 + $0x3a8] sm:$0xff] }
 0x27a   :  { %2237 = vmatpush3.bf16.msra.mxu0 %v582_v53  ;;  %2238 = vmatprep.mubr.msk.bf16.mxu0 %vm2355_vm2, %v2354_v1  ;;  %v846_v55 = vpack.c.bf16 %v1922_v51, %v1921_v50  ;;  %v1948_v50 = vld [vmem:[%s3415_s5 + $0x3e8] sm:$0xff] }
 0x27b   :  { %2232 = vmatprep.mubr.msk.bf16.mxu1 %vm2355_vm2, %v2354_v1  ;;  %706 = vmatprep.subr.bf16.mxu0 %v638_v58  ;;  %v1923_v58 = vld [vmem:[%s3415_s5 + $0x320] sm:$0xff] }
 0x27c   :  { %2229 = vmatpush3.bf16.msra.mxu1 %v512_v62 }
 0x27d   :  { %2230 = vmatprep.subr.bf16.mxu1 %v2354_v1 }
 0x280   :  { %2231 = vmatpush3.bf16.msra.mxu1 %v513_v4 }
 0x281   :  { %2239 = vmatmul.mubr.msk.bf16.vlgmr.msra.gmra.mrb[8].mxu0 %vm85_vm1, %v576_v54  ;;  %665 = vmatprep.subr.bf16.mxu1 %v636_v7  ;;  %v1925_v7 = vld [vmem:[%s3415_s5 + $0x330] sm:$0xff] }
 0x282   :  { %738 = vmatprep.mubr.bf16.mxu0 %v2356_v27  ;;  %707 = vmatpush1.bf16.msra.mxu0 %v637_v59  ;;  %v1924_v59 = vld [vmem:[%s3415_s5 + $0x328] sm:$0xff] }
 0x283   :  { %2139 = vmatprep.subr.bf16.mxu0 %v853_v12  ;;  %v847_v0 = vpack.c.bf16 %v1924_v59, %v1923_v58  ;;  %v1903_v58 = vld [vmem:[%s3415_s5 + $0x280] sm:$0xff]  ;;  %v1904_v59 = vld [vmem:[%s3415_s5 + $0x288] sm:$0xff] }
 0x284   :  { %v837_v61 = vpack.c.bf16 %v1904_v59, %v1903_v58 }
 0x34c   :  { %v2084_v16 = vpop.f32.mrb[8].mxu1  ;;  %v2106_v20 = vpop.f32.mrb[4].mxu0 }
 0x34d   :  { %v2085_v22 = vpop.f32.mrb[9].mxu1  ;;  %v2107_v23 = vpop.f32.mrb[5].mxu0 }
 0x34e   :  { %v2086_v24 = vadd.f32 %v2085_v22, %v2084_v16  ;;  %v2108_v25 = vadd.f32 %v2107_v23, %v2106_v20  ;;  %v2087_v26 = vpop.f32.mrb[10].mxu1  ;;  %v2109_v28 = vpop.f32.mrb[6].mxu0  ;;  %v848_v16 = vpack.c.bf16 %v1926_v8, %v1925_v7  ;;  %v857_v22 = vpack.c.bf16 %v1944_v10, %v1943_v9  ;;  %v1927_v23 = vld [vmem:[%s3415_s5 + $0x340] sm:$0xff]  ;;  %v1890_v7 = vld [vmem:[%s3415_s5 + $0x218] sm:$0xff]  ;;  %v1908_v9 = vld [vmem:[%s3415_s5 + $0x2a8] sm:$0xff] }
 0x34f   :  { %v2088_v5 = vpop.f32.mrb[11].mxu1  ;;  %v2110_v2 = vpop.f32.mrb[7].mxu0  ;;  %v1946_v26 = vld [vmem:[%s3415_s5 + $0x3d8] sm:$0xff]  ;;  %v1907_v8 = vld [vmem:[%s3415_s5 + $0x2a0] sm:$0xff] }
 0x350   :  { %v418_v29 = vadd.f32 %v2086_v24, %v1866_v21  ;;  %v1928_v24 = vld [vmem:[%s3415_s5 + $0x348] sm:$0xff] }
 0x351   :  { %v849_v5 = vpack.c.bf16 %v1928_v24, %v1927_v23  ;;  %v1893_v24 = vld [vmem:[%s3415_s5 + $0x230] sm:$0xff] }
 0x352   :  { %v2789_v30 = vadd.f32 %v2108_v25, %v418_v29  ;;  %v1945_v25 = vld [vmem:[%s3415_s5 + $0x3d0] sm:$0xff] }
 0x353   :  { %v858_v29 = vpack.c.bf16 %v1946_v26, %v1945_v25  ;;  %v1894_v25 = vld [vmem:[%s3415_s5 + $0x238] sm:$0xff] }
 0x354   :  { %v466_v34 = vsel %vm465_vm9, %v2789_v30, 0.0  ;;  %v474_v35 = vmul.f32 %v2789_v30, %v2789_v30  ;;  %v618_v36 = vpop.f32.mrb[8].mxu0  ;;  %v832_v26 = vpack.c.bf16 %v1894_v25, %v1893_v24 }
 0x355   :  { %v467_v39 = vrot.slane %v466_v34, 4  ;;  %v624_v40 = vmul.f32 %v2722_v19, %v618_v36  ;;  %v2240_v41 = vpop.f32.mrb[9].mxu0  ;;  %v1939_v19 = vld [vmem:[%s3415_s5 + $0x3a0] sm:$0xff] }
 0x356   :  { %v475_v42 = vsel %vm465_vm9, %v474_v35, 0.0  ;;  %v621_v43 = vpop.f32.mrb[10].mxu0  ;;  %v855_v31 = vpack.c.bf16 %v1940_v52, %v1939_v19  ;;  %v504_v41 = vstv %s1862_s22  ;;  %v1931_v19 = vld [vmem:[%s3415_s5 + $0x360] sm:$0xff]  ;;  %v1932_v52 = vld [vmem:[%s3415_s5 + $0x368] sm:$0xff] }
 0x357   :  { %v468_v45 = vadd.f32 %v467_v39, %v466_v34  ;;  %v476_v46 = vrot.slane %v475_v42, 4  ;;  %v2809_v47 = vpack.c.bf16 %v624_v40, %v624_v40  ;;  %v2241_v48 = vpop.f32.mrb[11].mxu0  ;;  %v850_v34 = vpack.c.bf16 %v1930_v33, %v1929_v32  ;;  %v1868_v39 = vld [vmem:[%s3418_s8] ss:$0 sm:$0xff]  ;;  %v1896_v32 = vld [vmem:[%s3415_s5 + $0x248] sm:$0xff] }
 0x358   :  { %v1876_v43 = vld [vmem:[%s3413_s3 + $0x40] sm:$0xff] }
 0x359   :  { %v469_v53 = vrot.slane %v468_v45, 2  ;;  %v477_v54 = vadd.f32 %v476_v46, %v475_v42  ;;  %1886 = vmatmul.mubr.msk.bf16.vlgmr.msra.gmra.mrb[12].mxu0 %vm177_vm4, %v2809_v47 }
 0x35a   :  { %2140 = vmatpush3.bf16.msra.mxu0 %v845_v44 }
 0x35b   :  { %v470_v56 = vadd.f32 %v469_v53, %v468_v45  ;;  %v478_v57 = vrot.slane %v477_v54, 2  ;;  %2141 = vmatprep.subr.bf16.mxu0 %v854_v49  ;;  %v1947_v49 = vld [vmem:[%s3415_s5 + $0x3e0] sm:$0xff]  ;;  %v851_v53 = vpack.c.bf16 %v1932_v52, %v1931_v19  ;;  %v1060_v19 = vpop.xlane.xlu1 %1059 }
 0x35c   :  { %v859_v51 = vpack.c.bf16 %v1948_v50, %v1947_v49  ;;  %v1901_v49 = vld [vmem:[%s3415_s5 + $0x270] sm:$0xff]  ;;  %v1902_v50 = vld [vmem:[%s3415_s5 + $0x278] sm:$0xff]  ;;  %v1884_v52 = vld [vmem:[%s3414_s4 + $0x4] sm:$0xf] }
 0x35d   :  { %v471_v62 = vrot.slane %v470_v56, 1  ;;  %v479_v63 = vadd.f32 %v478_v57, %v477_v54  ;;  %v1950_v54 = vld [vmem:[%s3415_s5 + $0x3f8] sm:$0xff] }
 0x35e   :  { %2142 = vmatpush3.bf16.msra.mxu0 %v846_v55  ;;  %v1934_v57 = vld [vmem:[%s3415_s5 + $0x378] sm:$0xff] }
 0x35f   :  { %v472_v3 = vadd.f32 %v471_v62, %v470_v56  ;;  %v480_v4 = vrot.slane %v479_v63, 1  ;;  %2143 = vmatprep.subr.bf16.mxu0 %v855_v31  ;;  %v1933_v56 = vld [vmem:[%s3415_s5 + $0x370] sm:$0xff]  ;;  %v1888_v62 = vld [vmem:[%s3415_s5 + $0x208] sm:$0xff] }
 0x360   :  { %v852_v31 = vpack.c.bf16 %v1934_v57, %v1933_v56  ;;  %v751_v57 = vstv %s1871_s27  ;;  %s1872_s27 = sld [smem:[#allocation2 + $0x4]] }
 0x361   :  { %v473_v12 = vmul.f32 0.125, %v472_v3  ;;  %v481_v13 = vadd.f32 %v480_v4, %v479_v63  ;;  %v1905_v63 = vld [vmem:[%s3415_s5 + $0x290] sm:$0xff]  ;;  %v829_v3 = vpack.c.bf16 %v1888_v62, %v1887_v60 }
 0x362   :  { %2144 = vmatpush3.bf16.msra.mxu0 %v847_v0  ;;  %v1906_v0 = vld [vmem:[%s3415_s5 + $0x298] sm:$0xff] }
 0x363   :  { %v482_v20 = vmul.f32 0.125, %v481_v13  ;;  %v483_v21 = vmul.f32 %v473_v12, %v473_v12  ;;  %2145 = vmatprep.subr.bf16.mxu0 %v856_v6  ;;  %v485_v35 = vsub.f32 %v2789_v30, %v473_v12  ;;  %v1880_v30 = vld [vmem:[%s3413_s3 + $0x60] sm:$0xff]  ;;  %v838_v4 = vpack.c.bf16 %v1906_v0, %v1905_v63  ;;  %v1889_v6 = vld [vmem:[%s3415_s5 + $0x210] sm:$0xff] }
 0x364   :  { %v635_v46 = vpack.c.bf16 %v1880_v30, %v1876_v43  ;;  %v830_v10 = vpack.c.bf16 %v1890_v7, %v1889_v6  ;;  %v839_v12 = vpack.c.bf16 %v1908_v9, %v1907_v8  ;;  %v1891_v13 = vld [vmem:[%s3415_s5 + $0x220] sm:$0xff]  ;;  %v1900_v30 = vld [vmem:[%s3415_s5 + $0x268] sm:$0xff] }
 0x365   :  { %v484_v28 = vsub.f32 %v482_v20, %v483_v21  ;;  %v1909_v20 = vld [vmem:[%s3415_s5 + $0x2b0] sm:$0xff]  ;;  %v1910_v21 = vld [vmem:[%s3415_s5 + $0x2b8] sm:$0xff]  ;;  %v1899_v43 = vld [vmem:[%s3415_s5 + $0x260] sm:$0xff] }
 0x366   :  { %2146 = vmatpush3.bf16.msra.mxu0 %v848_v16  ;;  %v1892_v16 = vld [vmem:[%s3415_s5 + $0x228] sm:$0xff]  ;;  %v840_v23 = vpack.c.bf16 %v1910_v21, %v1909_v20  ;;  %v645_v21 = vrot.slane %v1884_v52, %v2708_v14 }
 0x367   :  { %v486_v2 = vadd.f32 1e-05, %v484_v28  ;;  %2147 = vmatprep.subr.bf16.mxu0 %v857_v22  ;;  %v831_v22 = vpack.c.bf16 %v1892_v16, %v1891_v13  ;;  %v1911_v28 = vld [vmem:[%s3415_s5 + $0x2c0] sm:$0xff] }
 0x369   :  { %2301 = vrsqrt.f32 %v486_v2 }
 0x36a   :  { %2148 = vmatpush3.bf16.msra.mxu0 %v849_v5  ;;  %v1912_v5 = vld [vmem:[%s3415_s5 + $0x2c8] sm:$0xff]  ;;  %2303 = vrsqrt.f32 %v1060_v19 }
 0x36b   :  { %2149 = vmatprep.subr.bf16.mxu0 %v858_v29  ;;  %v841_v2 = vpack.c.bf16 %v1912_v5, %v1911_v28  ;;  %v1895_v29 = vld [vmem:[%s3415_s5 + $0x240] sm:$0xff] }
 0x36c   :  { %v833_v33 = vpack.c.bf16 %v1896_v32, %v1895_v29 }
 0x36e   :  { %2150 = vmatpush3.bf16.msra.mxu0 %v850_v34  ;;  %v1913_v34 = vld [vmem:[%s3415_s5 + $0x2d0] sm:$0xff] }
 0x36f   :  { %2151 = vmatprep.subr.bf16.mxu0 %v859_v51  ;;  %v836_v51 = vpack.c.bf16 %v1902_v50, %v1901_v49  ;;  %v2028_v50 = vld [vmem:[%s3415_s5 + $0x580] sm:$0xff] }
 0x372   :  { %2152 = vmatpush3.bf16.msra.mxu0 %v851_v53 }
 0x373   :  { %v2302_v36 = vpop.eup %2301 }
 0x374   :  { %v488_v38 = vmul.f32 %v2302_v36, %v485_v35  ;;  %v1914_v35 = vld [vmem:[%s3415_s5 + $0x2d8] sm:$0xff]  ;;  %v1897_v36 = vld [vmem:[%s3415_s5 + $0x250] sm:$0xff]  ;;  %v3009_v53 = vpop.eup %2303 }
 0x376   :  { %v495_v40 = vmul.f32 %v1867_v37, %v488_v38  ;;  %v842_v37 = vpack.c.bf16 %v1914_v35, %v1913_v34  ;;  %v1898_v38 = vld [vmem:[%s3415_s5 + $0x258] sm:$0xff] }
 0x377   :  { %v1972_v35 = vld [vmem:[%s3413_s3 + $0x98] sm:$0xff] }
 0x378   :  { %v502_v42 = vadd.f32 %v1868_v39, %v495_v40  ;;  %v834_v39 = vpack.c.bf16 %v1898_v38, %v1897_v36  ;;  %v1915_v40 = vld [vmem:[%s3415_s5 + $0x2e0] sm:$0xff]  ;;  %v1976_v36 = vld [vmem:[%s3413_s3 + $0xb8] sm:$0xff]  ;;  %v1971_v38 = vld [vmem:[%s3413_s3 + $0x90] sm:$0xff] }
 0x37a   :  { %vm503_vm10 = vcmp.gt.f32.partialorder %v502_v42, 0.0  ;;  %v505_v44 = vmul.f32 %v504_v41, %v502_v42  ;;  %v1916_v41 = vld [vmem:[%s3415_s5 + $0x2e8] sm:$0xff] }
 0x37c   :  { %v506_v45 = vsel %vm503_vm10, %v502_v42, %v505_v44  ;;  %v843_v42 = vpack.c.bf16 %v1916_v41, %v1915_v40  ;;  %v835_v44 = vpack.c.bf16 %v1900_v30, %v1899_v43  ;;  %v1957_v41 = vld [vmem:[%s3419_s9 + $0x20] sm:$0xff]  ;;  %v1959_v30 = vld [vmem:[%s3419_s9 + $0x30] sm:$0xff] }
 0x37d   :  { %v511_v48 = vpack.c.bf16 %v506_v45, %v506_v45  ;;  %v1917_v45 = vld [vmem:[%s3415_s5 + $0x2f0] sm:$0xff] }
 0x37f   :  { %2233 = vmatmul.mubr.msk.bf16.vlgmr.msra.gmra.mrb[12].mxu1 %vm465_vm9, %v511_v48 }
 0x380   :  { %666 = vmatpush1.bf16.msra.mxu1 %v635_v46  ;;  %697 = vmatprep.mubr.bf16.mxu1 %v2356_v27  ;;  %v1918_v46 = vld [vmem:[%s3415_s5 + $0x2f8] sm:$0xff] }
 0x381   :  { %2117 = vmatprep.subr.bf16.mxu1 %v837_v61  ;;  %v844_v48 = vpack.c.bf16 %v1918_v46, %v1917_v45  ;;  %v1970_v45 = vld [vmem:[%s3413_s3 + $0x88] sm:$0xff] }
 0x387   :  { %1885 = vmatmul.mubr.msk.bf16.vlgmr.msra.gmra.mrb[16].mxu1 %vm177_vm4, %v2809_v47  ;;  %v1949_v47 = vld [vmem:[%s3415_s5 + $0x3f0] sm:$0xff] }
 0x388   :  { %v860_v55 = vpack.c.bf16 %v1950_v54, %v1949_v47  ;;  %2118 = vmatpush3.bf16.msra.mxu1 %v829_v3  ;;  %v653_v47 = vrot.slane %v1884_v52, %v2711_v15  ;;  %v1967_v54 = vld [vmem:[%s3436_s23 + $0x10] sm:$0xff] }
 0x389   :  { %2119 = vmatprep.subr.bf16.mxu1 %v838_v4 }
 0x38a   :  { %2153 = vmatprep.subr.bf16.mxu0 %v860_v55  ;;  %v657_v55 = vrot.slane %v1884_v52, %v2720_v18 }
 0x38b   :  { %2154 = vmatpush3.bf16.msra.mxu0 %v852_v31  ;;  %v1064_v31 = vmul.f32 %v3009_v53, %v1967_v54 }
 0x38c   :  { %2250 = vmatprep.subr.bf16.mxu0 %v2354_v1  ;;  %2120 = vmatpush3.bf16.msra.mxu1 %v830_v10  ;;  %v1065_v10 = vpack.c.bf16 %v2782_v11, %v2782_v11 }
 0x38d   :  { %2121 = vmatprep.subr.bf16.mxu1 %v839_v12  ;;  %v1066_v3 = vpack.c.bf16 %v1064_v31, %v1064_v31  ;;  %v2013_v31 = vld [vmem:[%s3415_s5 + $0x508] sm:$0xff] }
 0x38f   :  { %v1071_v9 = vsel %vm97_vm3, %v1066_v3, 0 }
 0x390   :  { %2122 = vmatpush3.bf16.msra.mxu1 %v831_v22  ;;  %v649_v22 = vrot.slane %v1884_v52, %v2717_v17 }
 0x391   :  { %2123 = vmatprep.subr.bf16.mxu1 %v840_v23 }
 0x394   :  { %2124 = vmatpush3.bf16.msra.mxu1 %v832_v26 }
 0x395   :  { %2125 = vmatprep.subr.bf16.mxu1 %v841_v2 }
 0x398   :  { %2126 = vmatpush3.bf16.msra.mxu1 %v833_v33 }
 0x399   :  { %2127 = vmatprep.subr.bf16.mxu1 %v842_v37  ;;  %v1127_v37 = vpack.c.bf16 %v1976_v36, %v1972_v35 }
 0x39c   :  { %2128 = vmatpush3.bf16.msra.mxu1 %v834_v39  ;;  %v1975_v39 = vld [vmem:[%s3413_s3 + $0xb0] sm:$0xff] }
 0x39d   :  { %2129 = vmatprep.subr.bf16.mxu1 %v843_v42  ;;  %v1126_v40 = vpack.c.bf16 %v1975_v39, %v1971_v38  ;;  %v1958_v42 = vld [vmem:[%s3419_s9 + $0x28] sm:$0xff]  ;;  %v2023_v38 = vld [vmem:[%s3415_s5 + $0x558] sm:$0xff] }
 0x39e   :  { %v1000_v43 = vpack.c.bf16 %v1958_v42, %v1957_v41  ;;  %v1952_v41 = vld [vmem:[%s3416_s6 + $0x1] ss:$0 sm:$0xff] }
 0x3a0   :  { %2130 = vmatpush3.bf16.msra.mxu1 %v835_v44  ;;  %v1960_v44 = vld [vmem:[%s3419_s9 + $0x38] sm:$0xff] }
 0x3a1   :  { %2131 = vmatprep.subr.bf16.mxu1 %v844_v48  ;;  %v1001_v46 = vpack.c.bf16 %v1960_v44, %v1959_v30  ;;  %v1974_v48 = vld [vmem:[%s3413_s3 + $0xa8] sm:$0xff] }
 0x3a2   :  { %v1125_v49 = vpack.c.bf16 %v1974_v48, %v1970_v45 }
 0x3a4   :  { %2132 = vmatpush3.bf16.msra.mxu1 %v836_v51  ;;  %v2029_v51 = vld [vmem:[%s3415_s5 + $0x588] sm:$0xff] }
 0x3a5   :  { %2242 = vmatprep.subr.bf16.mxu1 %v2354_v1  ;;  %v1342_v19 = vpack.c.bf16 %v2029_v51, %v2028_v50 }
 0x42c   :  { %v740_v56 = vpop.f32.mrb[12].mxu0 }
 0x42d   :  { %v741_v58 = vadd.f32 %v740_v56, %v653_v47  ;;  %v742_v59 = vpop.f32.mrb[13].mxu0 }
 0x42e   :  { %v743_v60 = vadd.f32 %v742_v59, %v657_v55  ;;  %v744_v61 = vpop.f32.mrb[14].mxu0  ;;  %v2030_v59 = vld [vmem:[%s3415_s5 + $0x590] sm:$0xff] }
 0x42f   :  { %vm749_vm11 = vcmp.gt.f32.partialorder %v741_v58, 0.0  ;;  %v754_v62 = vmul.f32 %v751_v57, %v741_v58  ;;  %v745_v63 = vpop.f32.mrb[15].mxu0 }
 0x430   :  { %vm750_vm12 = vcmp.gt.f32.partialorder %v743_v60, 0.0  ;;  %v755_v0 = vmul.f32 %v751_v57, %v743_v60 }
 0x431   :  { %v758_v4 = vsel %vm749_vm11, %v741_v58, %v754_v62 }
 0x432   :  { %v759_v6 = vsel %vm750_vm12, %v743_v60, %v755_v0  ;;  %v827_v8 = vpack.c.bf16 %v758_v4, %v758_v4  ;;  %v2031_v60 = vld [vmem:[%s3415_s5 + $0x598] sm:$0xff] }
 0x433   :  { %v828_v7 = vpack.c.bf16 %v759_v6, %v759_v6  ;;  %v1343_v6 = vpack.c.bf16 %v2031_v60, %v2030_v59 }
 0x435   :  { %941 = vmatprep.mubr.bf16.mxu0 %v828_v7  ;;  %v2014_v7 = vld [vmem:[%s3415_s5 + $0x510] sm:$0xff] }
 0x436   :  { %942 = vmatmul.mubr.bf16.vlgmr.msra.gmra.mrb[16].mxu0 %v827_v8  ;;  %v2015_v8 = vld [vmem:[%s3415_s5 + $0x518] sm:$0xff] }
 0x437   :  { %2251 = vmatpush3.bf16.msra.mxu0 %v1071_v9  ;;  %2252 = vmatprep.mubr.msk.bf16.mxu0 %vm2355_vm2, %v2354_v1  ;;  %v2032_v9 = vld [vmem:[%s3415_s5 + $0x5a0] sm:$0xff] }
 0x438   :  { %1195 = vmatprep.subr.bf16.mxu0 %v1127_v37  ;;  %v2022_v37 = vld [vmem:[%s3415_s5 + $0x550] sm:$0xff] }
 0x439   :  { %v1339_v39 = vpack.c.bf16 %v2023_v38, %v2022_v37  ;;  %v1996_v37 = vld [vmem:[%s3415_s5 + $0x480] sm:$0xff]  ;;  %v1997_v38 = vld [vmem:[%s3415_s5 + $0x488] sm:$0xff] }
 0x43e   :  { %2253 = vmatmul.mubr.msk.bf16.vlgmr.msra.gmra.mrb[20].mxu0 %vm85_vm1, %v1065_v10  ;;  %v1335_v10 = vpack.c.bf16 %v2015_v8, %v2014_v7  ;;  %v1955_v8 = vld [vmem:[%s3417_s7 + $0x1] ss:$0 sm:$0xff] }
 0x43f   :  { %1227 = vmatprep.mubr.bf16.mxu0 %v2356_v27  ;;  %1196 = vmatpush1.bf16.msra.mxu0 %v1126_v40 }
 0x440   :  { %2188 = vmatprep.subr.bf16.mxu0 %v1342_v19 }
 0x452   :  { %v3024_v12 = vpop.f32.mrb[12].mxu1 }
 0x453   :  { %v2234_v13 = vpop.f32.mrb[13].mxu1 }
 0x454   :  { %v561_v16 = vpop.f32.mrb[14].mxu1 }
 0x455   :  { %v2235_v20 = vpop.f32.mrb[15].mxu1  ;;  %v2016_v16 = vld [vmem:[%s3415_s5 + $0x520] sm:$0xff] }
 0x456   :  { %v2017_v20 = vld [vmem:[%s3415_s5 + $0x528] sm:$0xff] }
 0x45a   :  { %v699_v23 = vpop.f32.mrb[16].mxu1 }
 0x45b   :  { %v700_v24 = vadd.f32 %v699_v23, %v645_v21  ;;  %v701_v25 = vpop.f32.mrb[17].mxu1  ;;  %v2034_v21 = vld [vmem:[%s3415_s5 + $0x5b0] sm:$0xff]  ;;  %v1336_v23 = vpack.c.bf16 %v2017_v20, %v2016_v16  ;;  %v1969_v20 = vld [vmem:[%s3413_s3 + $0x80] sm:$0xff] }
 0x45c   :  { %v702_v26 = vadd.f32 %v701_v25, %v649_v22  ;;  %v703_v28 = vpop.f32.mrb[18].mxu1  ;;  %v2035_v22 = vld [vmem:[%s3415_s5 + $0x5b8] sm:$0xff]  ;;  %v2018_v25 = vld [vmem:[%s3415_s5 + $0x530] sm:$0xff] }
 0x45d   :  { %vm747_vm13 = vcmp.gt.f32.partialorder %v700_v24, 0.0  ;;  %v752_v11 = vmul.f32 %v751_v57, %v700_v24  ;;  %v704_v5 = vpop.f32.mrb[19].mxu1  ;;  %v2036_v28 = vld [vmem:[%s3415_s5 + $0x5c0] sm:$0xff] }
 0x45e   :  { %vm748_vm14 = vcmp.gt.f32.partialorder %v702_v26, 0.0  ;;  %v753_v2 = vmul.f32 %v751_v57, %v702_v26  ;;  %v2012_v57 = vld [vmem:[%s3415_s5 + $0x500] sm:$0xff] }
 0x45f   :  { %v756_v29 = vsel %vm747_vm13, %v700_v24, %v752_v11  ;;  %v1334_v0 = vpack.c.bf16 %v2013_v31, %v2012_v57  ;;  %v1345_v24 = vpack.c.bf16 %v2035_v22, %v2034_v21  ;;  %v2037_v11 = vld [vmem:[%s3415_s5 + $0x5c8] sm:$0xff]  ;;  %v1973_v21 = vld [vmem:[%s3413_s3 + $0xa0] sm:$0xff] }
 0x460   :  { %v757_v32 = vsel %vm748_vm14, %v702_v26, %v753_v2  ;;  %v825_v34 = vpack.c.bf16 %v756_v29, %v756_v29  ;;  %v2019_v26 = vld [vmem:[%s3415_s5 + $0x538] sm:$0xff]  ;;  %v1346_v2 = vpack.c.bf16 %v2037_v11, %v2036_v28  ;;  %v2020_v29 = vld [vmem:[%s3415_s5 + $0x540] sm:$0xff]  ;;  %v2041_v28 = vld [vmem:[%s3415_s5 + $0x5e8] sm:$0xff] }
 0x461   :  { %v826_v33 = vpack.c.bf16 %v757_v32, %v757_v32  ;;  %v1337_v5 = vpack.c.bf16 %v2019_v26, %v2018_v25  ;;  %v2021_v32 = vld [vmem:[%s3415_s5 + $0x548] sm:$0xff]  ;;  %v2040_v26 = vld [vmem:[%s3415_s5 + $0x5e0] sm:$0xff] }
 0x462   :  { %v1338_v35 = vpack.c.bf16 %v2021_v32, %v2020_v29  ;;  %v1348_v11 = vpack.c.bf16 %v2041_v28, %v2040_v26  ;;  %v2042_v32 = vld [vmem:[%s3415_s5 + $0x5f0] sm:$0xff]  ;;  %v1995_v26 = vld [vmem:[%s3415_s5 + $0x478] sm:$0xff] }
 0x463   :  { %901 = vmatprep.mubr.bf16.mxu1 %v826_v33  ;;  %v2038_v33 = vld [vmem:[%s3415_s5 + $0x5d0] sm:$0xff] }
 0x464   :  { %902 = vmatmul.mubr.bf16.vlgmr.msra.gmra.mrb[20].mxu1 %v825_v34  ;;  %v2039_v34 = vld [vmem:[%s3415_s5 + $0x5d8] sm:$0xff] }
 0x465   :  { %2246 = vmatprep.mubr.msk.bf16.mxu1 %vm2355_vm2, %v2354_v1  ;;  %2243 = vmatpush3.bf16.msra.mxu1 %v1000_v43  ;;  %v1347_v36 = vpack.c.bf16 %v2039_v34, %v2038_v33  ;;  %v2043_v33 = vld [vmem:[%s3415_s5 + $0x5f8] sm:$0xff] }
 0x466   :  { %2244 = vmatprep.subr.bf16.mxu1 %v2354_v1  ;;  %v1349_v34 = vpack.c.bf16 %v2043_v33, %v2042_v32  ;;  %v1240_v32 = vstv %s1964_s20 }
 0x469   :  { %2245 = vmatpush3.bf16.msra.mxu1 %v1001_v46 }
 0x46a   :  { %1154 = vmatprep.subr.bf16.mxu1 %v1125_v49 }
 0x509   :  { %v2155_v52 = vpop.f32.mrb[16].mxu0 }
 0x50a   :  { %v2156_v47 = vpop.f32.mrb[17].mxu0 }
 0x50b   :  { %v2157_v54 = vadd.f32 %v2156_v47, %v2155_v52  ;;  %v2158_v55 = vpop.f32.mrb[18].mxu0 }
 0x50c   :  { %v2159_v56 = vpop.f32.mrb[19].mxu0 }
 0x511   :  { %v1107_v58 = vpop.f32.mrb[20].mxu0 }
 0x512   :  { %v1113_v61 = vmul.f32 %v3009_v53, %v1107_v58  ;;  %v2254_v62 = vpop.f32.mrb[21].mxu0  ;;  %v2033_v53 = vld [vmem:[%s3415_s5 + $0x5a8] sm:$0xff] }
 0x513   :  { %v1110_v63 = vpop.f32.mrb[22].mxu0  ;;  %v1344_v13 = vpack.c.bf16 %v2033_v53, %v2032_v9  ;;  %v1956_v53 = vld [vmem:[%s3418_s8 + $0x1] ss:$0 sm:$0xff] }
 0x514   :  { %v3080_v3 = vpack.c.bf16 %v1113_v61, %v1113_v61  ;;  %v2255_v4 = vpop.f32.mrb[23].mxu0 }
 0x516   :  { %1979 = vmatmul.mubr.msk.bf16.vlgmr.msra.gmra.mrb[24].mxu0 %vm177_vm4, %v3080_v3 }
 0x517   :  { %2189 = vmatpush3.bf16.msra.mxu0 %v1334_v0 }
 0x518   :  { %2190 = vmatprep.subr.bf16.mxu0 %v1343_v6 }
 0x51b   :  { %2191 = vmatpush3.bf16.msra.mxu0 %v1335_v10 }
 0x51c   :  { %2192 = vmatprep.subr.bf16.mxu0 %v1344_v13  ;;  %v991_v13 = vstv %s1872_s27  ;;  %s2339_s27 = scalar_lea.hbm %s3428_s18, 16 }
 0x51d   :  { %p2340_p5 = scmp.ne.s32.totalorder %s3428_s18, %s2339_s27  ;;  %p2343_p6 = scmp.lt.u32.totalorder %s2339_s27, %s3428_s18 }
 0x51f   :  { %2193 = vmatpush3.bf16.msra.mxu0 %v1336_v23  ;;  %p2345_p7 = pnand %p2343_p6, %p2340_p5 }
 0x520   :  { %2194 = vmatprep.subr.bf16.mxu0 %v1345_v24  ;;  %v1124_v24 = vpack.c.bf16 %v1973_v21, %v1969_v20  ;;  %v1993_v20 = vld [vmem:[%s3415_s5 + $0x468] sm:$0xff] }
 0x523   :  { %2195 = vmatpush3.bf16.msra.mxu0 %v1337_v5  ;;  %v2024_v5 = vld [vmem:[%s3415_s5 + $0x560] sm:$0xff] }
 0x524   :  { %2196 = vmatprep.subr.bf16.mxu0 %v1346_v2  ;;  %v2025_v2 = vld [vmem:[%s3415_s5 + $0x568] sm:$0xff] }
 0x525   :  { %v1340_v29 = vpack.c.bf16 %v2025_v2, %v2024_v5 }
 0x527   :  { %2197 = vmatpush3.bf16.msra.mxu0 %v1338_v35  ;;  %v2026_v35 = vld [vmem:[%s3415_s5 + $0x570] sm:$0xff] }
 0x528   :  { %2198 = vmatprep.subr.bf16.mxu0 %v1347_v36  ;;  %v2027_v36 = vld [vmem:[%s3415_s5 + $0x578] sm:$0xff] }
 0x52b   :  { %2199 = vmatpush3.bf16.msra.mxu0 %v1339_v39  ;;  %v1980_v39 = vld [vmem:[%s3415_s5 + $0x400] sm:$0xff] }
 0x52c   :  { %2200 = vmatprep.subr.bf16.mxu0 %v1348_v11  ;;  %v1977_v11 = vld [vmem:[%s3414_s4 + $0x8] sm:$0xf]  ;;  %s1828_s4 = smul.f32 2.0, %s2058_s24 }
 0x52d   :  { %v1142_v5 = vrot.slane %v1977_v11, %v2711_v15  ;;  %v1146_v2 = vrot.slane %v1977_v11, %v2720_v18  ;;  %v1545_v15 = vld [vmem:[%s3421_s11 + $0x8] sm:$0xff] }
 0x52f   :  { %2201 = vmatpush3.bf16.msra.mxu0 %v1340_v29 }
 0x530   :  { %2202 = vmatprep.subr.bf16.mxu0 %v1349_v34 }
 0x537   :  { %v2133_v40 = vpop.f32.mrb[20].mxu1 }
 0x538   :  { %v2134_v42 = vpop.f32.mrb[21].mxu1 }
 0x539   :  { %v2135_v43 = vadd.f32 %v2134_v42, %v2133_v40  ;;  %v2136_v30 = vpop.f32.mrb[22].mxu1  ;;  %v1326_v40 = vpack.c.bf16 %v1997_v38, %v1996_v37  ;;  %v1999_v42 = vld [vmem:[%s3415_s5 + $0x498] sm:$0xff] }
 0x53a   :  { %v2137_v44 = vpop.f32.mrb[23].mxu1 }
 0x53b   :  { %v904_v45 = vadd.f32 %v2135_v43, %v1952_v41  ;;  %v1981_v41 = vld [vmem:[%s3415_s5 + $0x408] sm:$0xff]  ;;  %v1982_v44 = vld [vmem:[%s3415_s5 + $0x410] sm:$0xff] }
 0x53c   :  { %v1318_v43 = vpack.c.bf16 %v1981_v41, %v1980_v39  ;;  %v1544_v39 = vld [vmem:[%s3421_s11] sm:$0xff] }
 0x53d   :  { %v944_v46 = vadd.f32 %v2157_v54, %v904_v45  ;;  %v1983_v45 = vld [vmem:[%s3415_s5 + $0x418] sm:$0xff] }
 0x53f   :  { %v953_v48 = vsel %vm465_vm9, %v944_v46, 0.0  ;;  %v961_v49 = vmul.f32 %v944_v46, %v944_v46 }
 0x540   :  { %v954_v50 = vrot.slane %v953_v48, 4 }
 0x541   :  { %v962_v51 = vsel %vm465_vm9, %v961_v49, 0.0  ;;  %v1319_v49 = vpack.c.bf16 %v1983_v45, %v1982_v44  ;;  %v1869_v44 = vld [vmem:[%s3420_s10] ss:$0 sm:$0xff] }
 0x542   :  { %v955_v19 = vadd.f32 %v954_v50, %v953_v48  ;;  %v963_v52 = vrot.slane %v962_v51, 4  ;;  %v2001_v48 = vld [vmem:[%s3415_s5 + $0x4a8] sm:$0xff] }
 0x544   :  { %v956_v47 = vrot.slane %v955_v19, 2  ;;  %v964_v55 = vadd.f32 %v963_v52, %v962_v51  ;;  %v1984_v51 = vld [vmem:[%s3415_s5 + $0x420] sm:$0xff]  ;;  %v2002_v52 = vld [vmem:[%s3415_s5 + $0x4b0] sm:$0xff] }
 0x546   :  { %v957_v56 = vadd.f32 %v956_v47, %v955_v19  ;;  %v965_v57 = vrot.slane %v964_v55, 2  ;;  %v1985_v19 = vld [vmem:[%s3415_s5 + $0x428] sm:$0xff]  ;;  %v2003_v47 = vld [vmem:[%s3415_s5 + $0x4b8] sm:$0xff] }
 0x548   :  { %v958_v31 = vrot.slane %v957_v56, 1  ;;  %v966_v58 = vadd.f32 %v965_v57, %v964_v55  ;;  %v1320_v55 = vpack.c.bf16 %v1985_v19, %v1984_v51  ;;  %v1986_v57 = vld [vmem:[%s3415_s5 + $0x430] sm:$0xff] }
 0x54a   :  { %v959_v59 = vadd.f32 %v958_v31, %v957_v56  ;;  %v967_v60 = vrot.slane %v966_v58, 1  ;;  %v1329_v56 = vpack.c.bf16 %v2003_v47, %v2002_v52  ;;  %v1987_v31 = vld [vmem:[%s3415_s5 + $0x438] sm:$0xff] }
 0x54c   :  { %v960_v61 = vmul.f32 0.125, %v959_v59  ;;  %v968_v62 = vadd.f32 %v967_v60, %v966_v58  ;;  %v1321_v58 = vpack.c.bf16 %v1987_v31, %v1986_v57  ;;  %v2004_v59 = vld [vmem:[%s3415_s5 + $0x4c0] sm:$0xff]  ;;  %v2005_v60 = vld [vmem:[%s3415_s5 + $0x4c8] sm:$0xff]  ;;  %v1138_v57 = vrot.slane %v1977_v11, %v2717_v17 }
 0x54e   :  { %v969_v63 = vmul.f32 0.125, %v968_v62  ;;  %v970_v54 = vmul.f32 %v960_v61, %v960_v61  ;;  %v972_v6 = vsub.f32 %v944_v46, %v960_v61  ;;  %v2000_v46 = vld [vmem:[%s3415_s5 + $0x4a0] sm:$0xff]  ;;  %v1330_v61 = vpack.c.bf16 %v2005_v60, %v2004_v59 }
 0x54f   :  { %v1328_v50 = vpack.c.bf16 %v2001_v48, %v2000_v46  ;;  %v1988_v62 = vld [vmem:[%s3415_s5 + $0x440] sm:$0xff]  ;;  %v559_v46 = vadd.f32 %v1869_v44, %v3024_v12 }
 0x550   :  { %v971_v0 = vsub.f32 %v969_v63, %v970_v54  ;;  %v1989_v63 = vld [vmem:[%s3415_s5 + $0x448] sm:$0xff] }
 0x551   :  { %v1322_v54 = vpack.c.bf16 %v1989_v63, %v1988_v62  ;;  %v1548_v48 = vpack.c.bf16 %v559_v46, %v559_v46 }
 0x552   :  { %v973_v4 = vadd.f32 1e-05, %v971_v0  ;;  %v2006_v0 = vld [vmem:[%s3415_s5 + $0x4d0] sm:$0xff] }
 0x554   :  { %2305 = vrsqrt.f32 %v973_v4  ;;  %v2007_v4 = vld [vmem:[%s3415_s5 + $0x4d8] sm:$0xff] }
 0x55e   :  { %v2306_v7 = vpop.eup %2305 }
 0x55f   :  { %v975_v9 = vmul.f32 %v2306_v7, %v972_v6  ;;  %v1331_v6 = vpack.c.bf16 %v2007_v4, %v2006_v0  ;;  %v1990_v7 = vld [vmem:[%s3415_s5 + $0x450] sm:$0xff] }
 0x561   :  { %v982_v10 = vmul.f32 %v1955_v8, %v975_v9  ;;  %v1991_v8 = vld [vmem:[%s3415_s5 + $0x458] sm:$0xff] }
 0x562   :  { %v1323_v9 = vpack.c.bf16 %v1991_v8, %v1990_v7 }
 0x563   :  { %v989_v16 = vadd.f32 %v1956_v53, %v982_v10  ;;  %v2008_v53 = vld [vmem:[%s3415_s5 + $0x4e0] sm:$0xff]  ;;  %v2009_v10 = vld [vmem:[%s3415_s5 + $0x4e8] sm:$0xff] }
 0x565   :  { %vm990_vm15 = vcmp.gt.f32.partialorder %v989_v16, 0.0  ;;  %v992_v22 = vmul.f32 %v991_v13, %v989_v16  ;;  %v1332_v13 = vpack.c.bf16 %v2009_v10, %v2008_v53  ;;  %v2050_v10 = vld [vmem:[%s3419_s9 + $0x40] sm:$0xff] }
 0x567   :  { %v993_v23 = vsel %vm990_vm15, %v989_v16, %v992_v22  ;;  %v1992_v16 = vld [vmem:[%s3415_s5 + $0x460] sm:$0xff]  ;;  %v2010_v22 = vld [vmem:[%s3415_s5 + $0x4f0] sm:$0xff] }
 0x568   :  { %v999_v25 = vpack.c.bf16 %v993_v23, %v993_v23  ;;  %v1324_v21 = vpack.c.bf16 %v1993_v20, %v1992_v16  ;;  %v2011_v23 = vld [vmem:[%s3415_s5 + $0x4f8] sm:$0xff] }
 0x56a   :  { %2247 = vmatmul.mubr.msk.bf16.vlgmr.msra.gmra.mrb[24].mxu1 %vm465_vm9, %v999_v25  ;;  %v1994_v25 = vld [vmem:[%s3415_s5 + $0x470] sm:$0xff] }
 0x56b   :  { %1155 = vmatpush1.bf16.msra.mxu1 %v1124_v24  ;;  %1186 = vmatprep.mubr.bf16.mxu1 %v2356_v27  ;;  %v1341_v27 = vpack.c.bf16 %v2027_v36, %v2026_v35  ;;  %v1333_v24 = vpack.c.bf16 %v2011_v23, %v2010_v22  ;;  %v1325_v28 = vpack.c.bf16 %v1995_v26, %v1994_v25  ;;  %v2053_v22 = vld [vmem:[%s3419_s9 + $0x58] sm:$0xff] }
 0x56c   :  { %2166 = vmatprep.subr.bf16.mxu1 %v1326_v40 }
 0x56d   :  { %2203 = vmatpush3.bf16.msra.mxu0 %v1341_v27 }
 0x56e   :  { %2264 = vmatprep.subr.bf16.mxu0 %v2354_v1 }
 0x572   :  { %1978 = vmatmul.mubr.msk.bf16.vlgmr.msra.gmra.mrb[28].mxu1 %vm177_vm4, %v3080_v3  ;;  %v1998_v3 = vld [vmem:[%s3415_s5 + $0x490] sm:$0xff] }
 0x573   :  { %v1327_v30 = vpack.c.bf16 %v1999_v42, %v1998_v3  ;;  %2167 = vmatpush3.bf16.msra.mxu1 %v1318_v43  ;;  %v1549_v3 = vpack.c.bf16 %v1545_v15, %v1544_v39  ;;  %v1546_v43 = vld [vmem:[%s3421_s11 + $0x10] sm:$0xff] }
 0x575   :  { %2168 = vmatprep.subr.bf16.mxu1 %v1327_v30  ;;  %v1547_v30 = vld [vmem:[%s3421_s11 + $0x18] sm:$0xff] }
 0x576   :  { %v1550_v45 = vpack.c.bf16 %v1547_v30, %v1546_v43 }
 0x577   :  { %2169 = vmatpush3.bf16.msra.mxu1 %v1319_v49  ;;  %v1962_v49 = vld [vmem:[%s3420_s10 + $0x1] ss:$0 sm:$0xff] }
 0x578   :  { %2170 = vmatprep.subr.bf16.mxu1 %v1328_v50 }
 0x57b   :  { %2171 = vmatpush3.bf16.msra.mxu1 %v1320_v55 }
 0x57c   :  { %2172 = vmatprep.subr.bf16.mxu1 %v1329_v56  ;;  %v1134_v56 = vrot.slane %v1977_v11, %v2708_v14 }
 0x57f   :  { %2173 = vmatpush3.bf16.msra.mxu1 %v1321_v58 }
 0x580   :  { %2174 = vmatprep.subr.bf16.mxu1 %v1330_v61 }
 0x583   :  { %2175 = vmatpush3.bf16.msra.mxu1 %v1322_v54 }
 0x584   :  { %2176 = vmatprep.subr.bf16.mxu1 %v1331_v6 }
 0x587   :  { %2177 = vmatpush3.bf16.msra.mxu1 %v1323_v9 }
 0x588   :  { %2178 = vmatprep.subr.bf16.mxu1 %v1332_v13  ;;  %v2051_v13 = vld [vmem:[%s3419_s9 + $0x48] sm:$0xff] }
 0x589   :  { %v1489_v16 = vpack.c.bf16 %v2051_v13, %v2050_v10 }
 0x58b   :  { %2179 = vmatpush3.bf16.msra.mxu1 %v1324_v21  ;;  %v2052_v21 = vld [vmem:[%s3419_s9 + $0x50] sm:$0xff]  ;;  %s1829_s9 = ssub.f32 1.0, %s1828_s4 }
 0x58c   :  { %2180 = vmatprep.subr.bf16.mxu1 %v1333_v24  ;;  %v1490_v24 = vpack.c.bf16 %v2053_v22, %v2052_v21  ;;  %v2048_v21 = vld [vmem:[%s3417_s7 + $0x2] ss:$0 sm:$0xff] }
 0x58f   :  { %2181 = vmatpush3.bf16.msra.mxu1 %v1325_v28  ;;  %v2059_v28 = vld [vmem:[%s3422_s12] ss:$0 sm:$0xff]  ;;  %s2057_s12 = sld [smem:[#allocation2 + $0x6]] }
 0x590   :  { %2256 = vmatprep.subr.bf16.mxu1 %v2354_v1 }
 0x5e9   :  { %v1229_v29 = vpop.f32.mrb[24].mxu0 }
 0x5ea   :  { %v1230_v33 = vadd.f32 %v1229_v29, %v1142_v5  ;;  %v1231_v34 = vpop.f32.mrb[25].mxu0 }
 0x5eb   :  { %v1232_v35 = vadd.f32 %v1231_v34, %v1146_v2  ;;  %v1233_v36 = vpop.f32.mrb[26].mxu0 }
 0x5ec   :  { %vm1238_vm0 = vcmp.gt.f32.partialorder %v1230_v33, 0.0  ;;  %v1243_v27 = vmul.f32 %v1240_v32, %v1230_v33  ;;  %v1234_v37 = vpop.f32.mrb[27].mxu0 }
 0x5ed   :  { %vm1239_vm3 = vcmp.gt.f32.partialorder %v1232_v35, 0.0  ;;  %v1244_v38 = vmul.f32 %v1240_v32, %v1232_v35 }
 0x5ee   :  { %v1247_v18 = vsel %vm1238_vm0, %v1230_v33, %v1243_v27 }
 0x5ef   :  { %v1248_v40 = vsel %vm1239_vm3, %v1232_v35, %v1244_v38  ;;  %v1316_v42 = vpack.c.bf16 %v1247_v18, %v1247_v18  ;;  %v2045_v18 = vld [vmem:[%s3416_s6 + $0x2] ss:$0 sm:$0xff]  ;;  %s1965_s6 = sld [smem:[#allocation2 + $0x5]] }
 0x5f0   :  { %v1317_v41 = vpack.c.bf16 %v1248_v40, %v1248_v40 }
 0x5f2   :  { %1430 = vmatprep.mubr.bf16.mxu0 %v1317_v41 }
 0x5f3   :  { %1431 = vmatmul.mubr.bf16.vlgmr.msra.gmra.mrb[28].mxu0 %v1316_v42 }
 0x5f4   :  { %2265 = vmatpush3.bf16.msra.mxu0 %v1549_v3  ;;  %2268 = vmatprep.mubr.msk.bf16.mxu0 %vm2355_vm2, %v2354_v1 }
 0x5f5   :  { %2266 = vmatprep.subr.bf16.mxu0 %v2354_v1 }
 0x5f8   :  { %2267 = vmatpush3.bf16.msra.mxu0 %v1550_v45 }
 0x5f9   :  { %2280 = vmatprep.subr.bf16.mxu0 %v2354_v1 }
 0x5fb   :  { %2269 = vmatmul.mubr.msk.bf16.vlgmr.msra.gmra.mrb[32].mxu0 %vm465_vm9, %v1548_v48 }
 0x5fc   :  { %2284 = vmatprep.mubr.msk.bf16.mxu0 %vm2355_vm2, %v2354_v1 }
 0x63d   :  { %v1047_v50 = vpop.f32.mrb[24].mxu1 }
 0x63e   :  { %v3312_v51 = vadd.f32 %v1962_v49, %v1047_v50  ;;  %v2248_v19 = vpop.f32.mrb[25].mxu1 }
 0x63f   :  { %v1050_v12 = vpop.f32.mrb[26].mxu1 }
 0x640   :  { %v2249_v52 = vpop.f32.mrb[27].mxu1  ;;  %v1713_v47 = vmul.f32 %v3312_v51, %v3312_v51 }
 0x642   :  { %v1714_v55 = vsel %vm465_vm9, %v1713_v47, 0.0 }
 0x643   :  { %1715 = vadd.xlane.f32.xlu1 %v1714_v55 }
 0x645   :  { %v1188_v31 = vpop.f32.mrb[28].mxu1 }
 0x646   :  { %v1189_v58 = vadd.f32 %v1188_v31, %v1134_v56  ;;  %v1190_v59 = vpop.f32.mrb[29].mxu1 }
 0x647   :  { %v1191_v60 = vadd.f32 %v1190_v59, %v1138_v57  ;;  %v1192_v61 = vpop.f32.mrb[30].mxu1 }
 0x648   :  { %vm1236_vm4 = vcmp.gt.f32.partialorder %v1189_v58, 0.0  ;;  %v1241_v62 = vmul.f32 %v1240_v32, %v1189_v58  ;;  %v1193_v63 = vpop.f32.mrb[31].mxu1 }
 0x649   :  { %vm1237_vm5 = vcmp.gt.f32.partialorder %v1191_v60, 0.0  ;;  %v1242_v54 = vmul.f32 %v1240_v32, %v1191_v60 }
 0x64a   :  { %v1245_v0 = vsel %vm1236_vm4, %v1189_v58, %v1241_v62 }
 0x64b   :  { %v1246_v4 = vsel %vm1237_vm5, %v1191_v60, %v1242_v54  ;;  %v1314_v7 = vpack.c.bf16 %v1245_v0, %v1245_v0 }
 0x64c   :  { %v1315_v6 = vpack.c.bf16 %v1246_v4, %v1246_v4 }
 0x64e   :  { %1390 = vmatprep.mubr.bf16.mxu1 %v1315_v6 }
 0x64f   :  { %1391 = vmatmul.mubr.bf16.vlgmr.msra.gmra.mrb[32].mxu1 %v1314_v7 }
 0x650   :  { %2260 = vmatprep.mubr.msk.bf16.mxu1 %vm2355_vm2, %v2354_v1  ;;  %2257 = vmatpush3.bf16.msra.mxu1 %v1489_v16 }
 0x651   :  { %2258 = vmatprep.subr.bf16.mxu1 %v2354_v1 }
 0x654   :  { %2259 = vmatpush3.bf16.msra.mxu1 %v1490_v24 }
 0x655   :  { %2272 = vmatprep.subr.bf16.mxu1 %v2354_v1 }
 0x6c6   :  { %v2204_v14 = vpop.f32.mrb[28].mxu0 }
 0x6c7   :  { %v2205_v17 = vpop.f32.mrb[29].mxu0 }
 0x6c8   :  { %v2206_v8 = vadd.f32 %v2205_v17, %v2204_v14  ;;  %v2207_v9 = vpop.f32.mrb[30].mxu0 }
 0x6c9   :  { %v2208_v53 = vpop.f32.mrb[31].mxu0 }
 0x6ce   :  { %v1595_v20 = vpop.f32.mrb[32].mxu0 }
 0x6cf   :  { %v2270_v23 = vpop.f32.mrb[33].mxu0  ;;  %v1596_v11 = vadd.f32 %v2059_v28, %v1595_v20  ;;  %v2061_v20 = vld [vmem:[%s3423_s13] ss:$0 sm:$0xff]  ;;  %v1480_v28 = vstv %s1965_s6 }
 0x6d0   :  { %v1598_v25 = vpop.f32.mrb[34].mxu0  ;;  %v2049_v23 = vld [vmem:[%s3418_s8 + $0x2] ss:$0 sm:$0xff] }
 0x6d1   :  { %v2271_v26 = vpop.f32.mrb[35].mxu0  ;;  %v1603_v5 = vsel %vm465_vm9, %v1596_v11, 0.0  ;;  %v1611_v2 = vmul.f32 %v1596_v11, %v1596_v11 }
 0x6d2   :  { %v1604_v29 = vrot.slane %v1603_v5, 4  ;;  %v2062_v26 = vld [vmem:[%s3424_s14] ss:$0 sm:$0xff] }
 0x6d3   :  { %v1612_v32 = vsel %vm465_vm9, %v1611_v2, 0.0  ;;  %v1645_v2 = vld [vmem:[%s3425_s15 + $0x8] sm:$0xff] }
 0x6d4   :  { %v1605_v33 = vadd.f32 %v1604_v29, %v1603_v5  ;;  %v1613_v34 = vrot.slane %v1612_v32, 4  ;;  %v1644_v5 = vld [vmem:[%s3425_s15] sm:$0xff] }
 0x6d6   :  { %v1606_v35 = vrot.slane %v1605_v33, 2  ;;  %v1614_v36 = vadd.f32 %v1613_v34, %v1612_v32 }
 0x6d8   :  { %v1607_v27 = vadd.f32 %v1606_v35, %v1605_v33  ;;  %v1615_v37 = vrot.slane %v1614_v36, 2  ;;  %v1641_v33 = vstv %s2057_s12  ;;  %v1649_v35 = vpack.c.bf16 %v1645_v2, %v1644_v5 }
 0x6da   :  { %v1608_v39 = vrot.slane %v1607_v27, 1  ;;  %v1616_v15 = vadd.f32 %v1615_v37, %v1614_v36  ;;  %v1647_v37 = vld [vmem:[%s3425_s15 + $0x18] sm:$0xff] }
 0x6dc   :  { %v1609_v30 = vadd.f32 %v1608_v39, %v1607_v27  ;;  %v1617_v44 = vrot.slane %v1616_v15, 1  ;;  %v1646_v27 = vld [vmem:[%s3425_s15 + $0x10] sm:$0xff] }
 0x6dd   :  { %v1650_v39 = vpack.c.bf16 %v1647_v37, %v1646_v27 }
 0x6de   :  { %v1610_v49 = vmul.f32 0.125, %v1609_v30  ;;  %v1618_v50 = vadd.f32 %v1617_v44, %v1616_v15 }
 0x6e0   :  { %v1619_v55 = vmul.f32 0.125, %v1618_v50  ;;  %v1620_v56 = vmul.f32 %v1610_v49, %v1610_v49  ;;  %v1622_v53 = vsub.f32 %v1596_v11, %v1610_v49 }
 0x6e2   :  { %v1621_v60 = vsub.f32 %v1619_v55, %v1620_v56 }
 0x6e4   :  { %v1623_v0 = vadd.f32 1e-05, %v1621_v60 }
 0x6e6   :  { %2307 = vrsqrt.f32 %v1623_v0 }
 0x6f0   :  { %v2308_v9 = vpop.eup %2307 }
 0x6f1   :  { %v1625_v10 = vmul.f32 %v2308_v9, %v1622_v53 }
 0x6f3   :  { %v1632_v24 = vmul.f32 %v2061_v20, %v1625_v10 }
 0x6f5   :  { %v1639_v29 = vadd.f32 %v2062_v26, %v1632_v24 }
 0x6f7   :  { %vm1640_vm7 = vcmp.gt.f32.partialorder %v1639_v29, 0.0 }
 0x722   :  { %v2182_v38 = vpop.f32.mrb[32].mxu1 }
 0x723   :  { %v2183_v40 = vpop.f32.mrb[33].mxu1 }
 0x724   :  { %v2184_v41 = vadd.f32 %v2183_v40, %v2182_v38  ;;  %v2185_v3 = vpop.f32.mrb[34].mxu1  ;;  %v1642_v38 = vmul.f32 %v1641_v33, %v1639_v29  ;;  %v1701_v40 = vld [vmem:[%s3427_s17] sm:$0xff] }
 0x725   :  { %v2186_v42 = vpop.f32.mrb[35].mxu1  ;;  %v1703_v3 = vsub.f32 1.0, %v1701_v40 }
 0x726   :  { %v1393_v43 = vadd.f32 %v2184_v41, %v2045_v18  ;;  %v1643_v15 = vsel %vm1640_vm7, %v1639_v29, %v1642_v38  ;;  %v2055_v41 = vld [vmem:[%s3420_s10 + $0x2] ss:$0 sm:$0xff]  ;;  %s2357_s10 = smov 112  }
 0x727   :  { %v1648_v18 = vpack.c.bf16 %v1643_v15, %v1643_v15 }
 0x728   :  { %v1433_v45 = vadd.f32 %v2206_v8, %v1393_v43 }
 0x72a   :  { %v1442_v46 = vsel %vm465_vm9, %v1433_v45, 0.0  ;;  %v1450_v48 = vmul.f32 %v1433_v45, %v1433_v45 }
 0x72b   :  { %v1443_v19 = vrot.slane %v1442_v46, 4 }
 0x72c   :  { %v1451_v12 = vsel %vm465_vm9, %v1450_v48, 0.0 }
 0x72d   :  { %v1444_v52 = vadd.f32 %v1443_v19, %v1442_v46  ;;  %v1452_v47 = vrot.slane %v1451_v12, 4 }
 0x72f   :  { %v1445_v57 = vrot.slane %v1444_v52, 2  ;;  %v1453_v31 = vadd.f32 %v1452_v47, %v1451_v12  ;;  %v2063_v12 = vld [vmem:[%s3426_s16] ss:$0 sm:$0xff]  ;;  %s2358_s16 = smov 120  }
 0x731   :  { %v1446_v58 = vadd.f32 %v1445_v57, %v1444_v52  ;;  %v1454_v59 = vrot.slane %v1453_v31, 2 }
 0x733   :  { %v1447_v61 = vrot.slane %v1446_v58, 1  ;;  %v1455_v62 = vadd.f32 %v1454_v59, %v1453_v31 }
 0x735   :  { %v1448_v63 = vadd.f32 %v1447_v61, %v1446_v58  ;;  %v1456_v54 = vrot.slane %v1455_v62, 1  ;;  %v1716_v61 = vpop.xlane.xlu1 %1715 }
 0x737   :  { %v1449_v4 = vmul.f32 0.125, %v1448_v63  ;;  %v1457_v6 = vadd.f32 %v1456_v54, %v1455_v62  ;;  %v1717_v62 = vadd.f32 1e-24, %v1716_v61 }
 0x739   :  { %v1458_v7 = vmul.f32 0.125, %v1457_v6  ;;  %v1459_v14 = vmul.f32 %v1449_v4, %v1449_v4  ;;  %v1461_v13 = vsub.f32 %v1433_v45, %v1449_v4  ;;  %v1702_v45 = vmul.f32 %v1701_v40, %v3312_v51 }
 0x73b   :  { %v1460_v17 = vsub.f32 %v1458_v7, %v1459_v14 }
 0x73d   :  { %v1462_v8 = vadd.f32 1e-05, %v1460_v17 }
 0x73f   :  { %2309 = vrsqrt.f32 %v1462_v8 }
 0x740   :  { %2311 = vrsqrt.f32 %v1717_v62 }
 0x749   :  { %v2310_v16 = vpop.eup %2309 }
 0x74a   :  { %v1464_v22 = vmul.f32 %v2310_v16, %v1461_v13  ;;  %v2312_v14 = vpop.eup %2311 }
 0x74b   :  { %v1719_v8 = vmul.f32 %v2312_v14, %v3312_v51 }
 0x74c   :  { %v1471_v25 = vmul.f32 %v2048_v21, %v1464_v22 }
 0x74e   :  { %v1478_v11 = vadd.f32 %v2049_v23, %v1471_v25 }
 0x750   :  { %vm1479_vm6 = vcmp.gt.f32.partialorder %v1478_v11, 0.0  ;;  %v1481_v32 = vmul.f32 %v1480_v28, %v1478_v11 }
 0x752   :  { %v1482_v34 = vsel %vm1479_vm6, %v1478_v11, %v1481_v32 }
 0x753   :  { %v1488_v36 = vpack.c.bf16 %v1482_v34, %v1482_v34 }
 0x755   :  { %2261 = vmatmul.mubr.msk.bf16.vlgmr.msra.gmra.mrb[36].mxu1 %vm465_vm9, %v1488_v36 }
 0x756   :  { %2273 = vmatpush3.bf16.msra.mxu1 %v1649_v35  ;;  %2276 = vmatprep.mubr.msk.bf16.mxu1 %vm2355_vm2, %v2354_v1 }
 0x757   :  { %2274 = vmatprep.subr.bf16.mxu1 %v2354_v1 }
 0x75a   :  { %2275 = vmatpush3.bf16.msra.mxu1 %v1650_v39 }
 0x75d   :  { %2277 = vmatmul.mubr.msk.bf16.vlgmr.msra.gmra.mrb[40].mxu1 %vm465_vm9, %v1648_v18 }
 0x828   :  { %v1536_v42 = vpop.f32.mrb[36].mxu1 }
 0x829   :  { %v1537_v43 = vadd.f32 %v2055_v41, %v1536_v42  ;;  %v2262_v30 = vpop.f32.mrb[37].mxu1 }
 0x82a   :  { %v1539_v44 = vpop.f32.mrb[38].mxu1 }
 0x82b   :  { %v1704_v46 = vmul.f32 %v1703_v3, %v1537_v43  ;;  %v2263_v48 = vpop.f32.mrb[39].mxu1  ;;  %v1720_v49 = vmul.f32 %v1537_v43, %v1537_v43 }
 0x82d   :  { %v1721_v50 = vsel %vm465_vm9, %v1720_v49, 0.0  ;;  %v1705_v19 = vadd.f32 %v1704_v46, %v1702_v45 }
 0x82e   :  { %1722 = vadd.xlane.f32.xlu0 %v1721_v50  ;;  %v1830_v50 = vstv %s1829_s9 }
 0x82f   :  { %v1727_v52 = vmul.f32 %v1705_v19, %v1705_v19 }
 0x830   :  { %v1695_v47 = vpop.f32.mrb[40].mxu1 }
 0x831   :  { %v1696_v55 = vadd.f32 %v2063_v12, %v1695_v47  ;;  %v2278_v56 = vpop.f32.mrb[41].mxu1  ;;  %v1728_v57 = vsel %vm465_vm9, %v1727_v52, 0.0  ;;  %v1826_v12 = vstv %s2058_s24 }
 0x832   :  { %1729 = vadd.xlane.f32.xlu1 %v1728_v57  ;;  %v1698_v31 = vpop.f32.mrb[42].mxu1 }
 0x833   :  { %v2279_v58 = vpop.f32.mrb[43].mxu1  ;;  %v1706_v59 = vmul.f32 %v1696_v55, %v1696_v55 }
 0x835   :  { %v1707_v60 = vsel %vm465_vm9, %v1706_v59, 0.0 }
 0x836   :  { %1708 = vadd.xlane.f32.xlu0 %v1707_v60 }
 0x8bb   :  { %v1723_v63 = vpop.xlane.xlu0 %1722 }
 0x8bc   :  { %v1724_v54 = vadd.f32 1e-24, %v1723_v63 }
 0x8be   :  { %2313 = vrsqrt.f32 %v1724_v54 }
 0x8bf   :  { %v1730_v0 = vpop.xlane.xlu1 %1729 }
 0x8c0   :  { %v1731_v4 = vadd.f32 1e-24, %v1730_v0 }
 0x8c2   :  { %2315 = vrsqrt.f32 %v1731_v4 }
 0x8c3   :  { %v1709_v6 = vpop.xlane.xlu0 %1708 }
 0x8c4   :  { %v1710_v7 = vadd.f32 1e-24, %v1709_v6 }
 0x8c6   :  { %2317 = vrsqrt.f32 %v1710_v7 }
 0x8c8   :  { %v2314_v17 = vpop.eup %2313 }
 0x8c9   :  { %v1726_v9 = vmul.f32 %v2314_v17, %v1537_v43 }
 0x8cb   :  { %v1735_v53 = vpack.c.bf16 %v1726_v9, %v1719_v8 }
 0x8cc   :  { %v2316_v10 = vpop.eup %2315 }
 0x8cd   :  { %v1741_v13 = vsel %vm465_vm9, %v1735_v53, 0  ;;  %v1733_v16 = vmul.f32 %v2316_v10, %v1705_v19 }
 0x8ce   :  { %2281 = vmatpush3.bf16.xpose.msra.mxu0 %v1741_v13 }
 0x8cf   :  { %2282 = vmatprep.subr.bf16.mxu0 %v2354_v1  ;;  %v1736_v22 = vpack.c.bf16 %v1733_v16, %v1733_v16 }
 0x8d0   :  { %v2318_v20 = vpop.eup %2317 }
 0x8d1   :  { %v1712_v21 = vmul.f32 %v2318_v20, %v1696_v55  ;;  %v1744_v26 = vsel %vm465_vm9, %v1736_v22, 0 }
 0x8d3   :  { %v1804_v23 = vmul.f32 %v1719_v8, %v1712_v21  ;;  %v1808_v24 = vmul.f32 %v1726_v9, %v1712_v21  ;;  %v1812_v25 = vmul.f32 %v1733_v16, %v1712_v21  ;;  %v1734_v28 = vpack.c.bf16 %v1712_v21, %v1712_v21 }
 0x8d5   :  { %v1805_v27 = vsel %vm465_vm9, %v1804_v23, 0.0  ;;  %v1809_v37 = vsel %vm465_vm9, %v1808_v24, 0.0  ;;  %v1813_v38 = vsel %vm465_vm9, %v1812_v25, 0.0 }
 0x8d6   :  { %2283 = vmatpush3.bf16.xpose.msra.mxu0 %v1744_v26 }
 0x8dd   :  { %2285 = vmatmul.mubr.msk.bf16.vlgmr.msra.gmra.mrb[36].mxu0 %vm465_vm9, %v1734_v28 }
 0x9b0   :  { %v1780_v51 = vpop.f32.mrb[36].mxu0 }
 0x9b1   :  { %v1786_v11 = vmul.f32 1.442695, %v1780_v51  ;;  %v2286_v5 = vpop.f32.mrb[37].mxu0 }
 0x9b2   :  { %v1783_v2 = vpop.f32.mrb[38].mxu0 }
 0x9b3   :  { %2319 = vpow2.f32 %v1786_v11  ;;  %v2287_v29 = vpop.f32.mrb[39].mxu0 }
 0x9bd   :  { %v2320_v32 = vpop.eup %2319 }
 0x9be   :  { %1798 = vrot.lane.b32.xlu0 %v2320_v32, %s2357_s10  ;;  %1792 = vrot.lane.b32.xlu1 %v2320_v32, %s2358_s16  ;;  %v1788_v1 = vsel %vm85_vm1, %v2320_v32, 0.0 }
 0x9e2   :  { %1789 = vadd.xlane.f32.xlu1 %v1788_v1 }
 0xa30   :  { %v1799_v33 = vpop.permute.xlu0 %1798  ;;  %v1793_v34 = vpop.permute.xlu1 %1792 }
 0xa31   :  { %v1795_v35 = vsel %vm85_vm1, %v1793_v34, 0.0  ;;  %v1801_v36 = vsel %vm85_vm1, %v1799_v33, 0.0  ;;  %vm1833_vm1 = vcmask 7168  }
 0xa32   :  { %1796 = vadd.xlane.f32.xlu0 %v1795_v35  ;;  %1802 = vadd.xlane.f32.xlu1 %v1801_v36 }
 0xa36   :  { %1806 = vadd.xlane.f32.xlu0 %v1805_v27  ;;  %1810 = vadd.xlane.f32.xlu1 %v1809_v37 }
 0xa3a   :  { %1814 = vadd.xlane.f32.xlu0 %v1813_v38 }
 0xa6f   :  { %v1790_v39 = vpop.xlane.xlu1 %1789 }
 0xa70   :  { %2321 = vlog2.f32 %v1790_v39 }
 0xa7a   :  { %v2322_v41 = vpop.eup %2321 }
 0xa7b   :  { %v1817_v43 = vmul.f32 0.6931472, %v2322_v41 }
 0xabf   :  { %v1797_v15 = vpop.xlane.xlu0 %1796  ;;  %v1803_v18 = vpop.xlane.xlu1 %1802 }
 0xac0   :  { %2323 = vlog2.f32 %v1797_v15 }
 0xac1   :  { %2325 = vlog2.f32 %v1803_v18 }
 0xac3   :  { %v1807_v40 = vpop.xlane.xlu0 %1806  ;;  %v1811_v44 = vpop.xlane.xlu1 %1810 }
 0xac4   :  { %v1818_v46 = vsub.f32 %v1817_v43, %v1807_v40 }
 0xac7   :  { %v1815_v49 = vpop.xlane.xlu0 %1814 }
 0xaca   :  { %v2324_v3 = vpop.eup %2323 }
 0xacb   :  { %v2326_v42 = vpop.eup %2325  ;;  %v1820_v30 = vmul.f32 0.6931472, %v2324_v3 }
 0xacc   :  { %v1823_v45 = vmul.f32 0.6931472, %v2326_v42 }
 0xacd   :  { %v1821_v48 = vsub.f32 %v1820_v30, %v1811_v44 }
 0xace   :  { %v1824_v19 = vsub.f32 %v1823_v45, %v1815_v49 }
 0xacf   :  { %v1825_v52 = vadd.f32 %v1821_v48, %v1818_v46 }
 0xad0   :  { %v1831_v47 = vmul.f32 %v1830_v50, %v1824_v19 }
 0xad1   :  { %v1827_v55 = vmul.f32 %v1826_v12, %v1825_v52 }
 0xad3   :  { %v1832_v56 = vadd.f32 %v1831_v47, %v1827_v55 }
 0xad5   :  { %v1834_v57 = vsel %vm1833_vm1, %v1832_v56, 0.0 }
 0xad6   :  { %1835 = vadd.xlane.f32.xlu1 %v1834_v57 }
 0xb63   :  { %v1836_v31 = vpop.xlane.xlu1 %1835 }
 0xb64   :  { %v1837_v58 = vrot.slane %v1836_v31, 4 }
 0xb66   :  { %v1838_v59 = vadd.f32 %v1837_v58, %v1836_v31 }
 0xb68   :  { %v1839_v60 = vrot.slane %v1838_v59, 2 }
 0xb6a   :  { %v1840_v61 = vadd.f32 %v1839_v60, %v1838_v59 }
 0xb6c   :  { %v1841_v62 = vrot.slane %v1840_v61, 1 }
 0xb6e   :  { %v1842_v63 = vadd.f32 %v1841_v62, %v1840_v61 }
 0xb70   :  { %2288 = vpush %v1842_v63 }
 0xba1   :  { %s2289_s25 = spop %2288 }
 0xba2   :  { %s1844_s6 = smul.f32 0.125, %s2289_s25 }
 0xba4   :  { %1846 = sst [smem:[#allocation5]] %s1844_s6 }
 0xba5   :  { %2348 = shalt.err (!%p2345_p7)
}
 0xba6   :  { %s2359_s11 = smov [#allocation5]  }
 0xba7   :  { %1854 = dma.smem_to_hbm %s2359_s11, 16, %s3428_s18, [#allocation3]  }
 0xba8   :  { %2351 = dma.done.wait [#allocation3], 16  }
 0xba9   :  { %2352 = vsyncadd [#allocation3], 4294967280 }
 0xbaa   :  { %1858 = sfence }
 0xbab   :  { %1859 = vsyncpa [#allocation3], 1 }
 0xbac   :  { %1860 = vsyncpa [#allocation4], 1 }

</bundles_post_ra>
